<compile_context>
chip_gen: v7x
topology: tpu7x:2x2x1
jax: 0.10.0
libtpu: 0.0.40
codegen_flags: <defaults>
</compile_context>

<pallas_src>
import functools

import jax
import jax.numpy as jnp
from jax import lax
from jax.experimental import pallas as pl
from jax.experimental.pallas import tpu as pltpu
import numpy as np


# ----------------------------------------------------------------------------
# Fused Pallas kernel
# ----------------------------------------------------------------------------
def tsae_fused_kernel(x_ref, enc_wih_ref, enc_whh_ref, enc_b_ref,
                      mean_w_ref, mean_b_ref, l2h_w_ref, l2h_b_ref,
                      dec_wih_ref, dec_whh_ref, dec_b_ref,
                      out_ref, latent_ref, *, seq_len, output_len):
    TB, D = x_ref.shape            # x is time-major flattened: (T*B, D)
    T = seq_len
    B = TB // T
    H = enc_whh_ref.shape[0]       # encoder hidden size
    Hd = dec_whh_ref.shape[0]      # decoder hidden size (= input_dim)

    # Loop-invariant gate constants, hoisted once per gate width.
    # Packed activation: tanh(x) on the g block, sigmoid(x)=0.5*tanh(0.5*x)+0.5
    # elsewhere  ->  act = tanh(gates * s) * s + a   with s in {1, 0.5},
    # a in {0, 0.5}. One EUP transcendental per step instead of two.
    def gate_consts(h_sz):
        lane = lax.broadcasted_iota(jnp.int32, (B, 4 * h_sz), 1)
        is_g = (lane >= 2 * h_sz) & (lane < 3 * h_sz)
        s = jnp.where(is_g, 1.0, 0.5).astype(jnp.float32)
        a = jnp.where(is_g, 0.0, 0.5).astype(jnp.float32)
        return s, a

    enc_s, enc_a = gate_consts(H)
    dec_s, dec_a = gate_consts(Hd)

    # ---------------- encoder LSTM ----------------
    # Input projection batched across all T steps in one matmul (off the
    # serial recurrence path).  xw row (t*B + b) holds x[b, t] @ W_ih + bias.
    xw = (jnp.dot(x_ref[...], enc_wih_ref[...],
                  preferred_element_type=jnp.float32)
          + enc_b_ref[...])                              # (T*B, 4H)
    enc_whh = enc_whh_ref[...]

    h = jnp.zeros((B, H), jnp.float32)
    c = jnp.zeros((B, H), jnp.float32)
    for t in range(T):                                   # small & static: unrolled
        gates = xw[t * B:(t + 1) * B, :] + jnp.dot(
            h, enc_whh, preferred_element_type=jnp.float32)
        act = jnp.tanh(gates * enc_s) * enc_s + enc_a
        i = act[:, 0 * H:1 * H]
        f = act[:, 1 * H:2 * H]
        g = act[:, 2 * H:3 * H]
        o = act[:, 3 * H:4 * H]
        c = f * c + i * g
        h = o * jnp.tanh(c)

    # ---------------- latent projections ----------------
    latent = jnp.tanh(
        jnp.dot(h, mean_w_ref[...], preferred_element_type=jnp.float32)
        + mean_b_ref[...]
    )
    latent_ref[...] = latent
    hidden2 = (
        jnp.dot(latent, l2h_w_ref[...], preferred_element_type=jnp.float32)
        + l2h_b_ref[...]
    )

    # ---------------- decoder LSTM ----------------
    # Input is the same (B, hidden_dim) vector every step -> hoist x@W_ih + b.
    xw_dec = (
        jnp.dot(hidden2, dec_wih_ref[...], preferred_element_type=jnp.float32)
        + dec_b_ref[...]
    )                                                    # (B, 4*Hd)
    dec_whh = dec_whh_ref[...]

    # Tiny recurrence (Hd = input_dim): keep it on the VPU instead of paying
    # MXU push/pop latency on every serial step.
    use_vpu_recurrence = Hd <= 8
    if use_vpu_recurrence:
        dec_whh_rows = [dec_whh[k:k + 1, :] for k in range(Hd)]   # (1, 4Hd) each

    hd = jnp.zeros((B, Hd), jnp.float32)
    cd = jnp.zeros((B, Hd), jnp.float32)
    for t in range(output_len):                          # small & static: unrolled
        if use_vpu_recurrence:
            rec = hd[:, 0:1] * dec_whh_rows[0]
            for k in range(1, Hd):
                rec = rec + hd[:, k:k + 1] * dec_whh_rows[k]
        else:
            rec = jnp.dot(hd, dec_whh, preferred_element_type=jnp.float32)
        gates = xw_dec + rec
        act = jnp.tanh(gates * dec_s) * dec_s + dec_a
        i = act[:, 0 * Hd:1 * Hd]
        f = act[:, 1 * Hd:2 * Hd]
        g = act[:, 2 * Hd:3 * Hd]
        o = act[:, 3 * Hd:4 * Hd]
        cd = f * cd + i * g
        hd = o * jnp.tanh(cd)
        # Direct per-step store (static lane slice); hidden under next step's
        # EUP/VPU work, avoids a final concat relayout.
        out_ref[:, t * Hd:(t + 1) * Hd] = hd


# ----------------------------------------------------------------------------
# Wrapper (single pallas_call, whole arrays resident in VMEM)
# ----------------------------------------------------------------------------
def tsae_forward(params, x):
    B, T, D = x.shape
    H = params["enc_whh"].shape[0]
    Hd = params["dec_whh"].shape[0]
    L = params["mean_w"].shape[1]
    output_len = params["output_len"]

    # Time-major flattened input: row (t*B + b) = x[b, t].  Layout plumbing
    # only -- keeps all per-step accesses inside the kernel contiguous.
    x_tm = jnp.swapaxes(x, 0, 1).reshape(T * B, D)

    args = (
        x_tm,
        params["enc_wih"], params["enc_whh"], params["enc_b"],
        params["mean_w"], params["mean_b"],
        params["l2h_w"], params["l2h_b"],
        params["dec_wih"], params["dec_whh"], params["dec_b"],
    )

    # Advisory cost estimate so XLA schedules surrounding ops sensibly.
    flops = (2 * B * T * D * 4 * H            # encoder input projection
             + T * 2 * B * H * 4 * H          # encoder recurrence
             + 2 * B * H * L + 2 * B * L * H  # latent projections
             + 2 * B * H * 4 * Hd             # decoder input projection
             + output_len * 2 * B * Hd * 4 * Hd)
    transcendentals = T * B * 5 * H + B * L + output_len * B * 5 * Hd
    bytes_accessed = (sum(int(np.prod(a.shape)) * 4 for a in args)
                      + B * output_len * Hd * 4 + B * L * 4)

    in_specs = [pl.BlockSpec(memory_space=pltpu.MemorySpace.VMEM)
                for _ in args]
    out_specs = (pl.BlockSpec(memory_space=pltpu.MemorySpace.VMEM),
                 pl.BlockSpec(memory_space=pltpu.MemorySpace.VMEM))

    out_flat, latent = pl.pallas_call(
        functools.partial(tsae_fused_kernel, seq_len=T, output_len=output_len),
        out_shape=(
            jax.ShapeDtypeStruct((B, output_len * Hd), jnp.float32),
            jax.ShapeDtypeStruct((B, L), jnp.float32),
        ),
        in_specs=in_specs,
        out_specs=out_specs,
        cost_estimate=pl.CostEstimate(flops=flops,
                                      transcendentals=transcendentals,
                                      bytes_accessed=bytes_accessed),
    )(*args)

    output = out_flat.reshape(B, output_len, Hd)   # batch_first, like PyTorch
    return output, latent


# ----------------------------------------------------------------------------
# Pure-JAX reference (PyTorch LSTM / Linear semantics) for verification
# ----------------------------------------------------------------------------
def _lstm_ref(x, wih, whh, b):
    B = x.shape[0]
    H = whh.shape[0]

    def step(carry, xt):
        h, c = carry
        gates = xt @ wih + h @ whh + b[0]
        i = jax.nn.sigmoid(gates[:, :H])
        f = jax.nn.sigmoid(gates[:, H:2 * H])
        g = jnp.tanh(gates[:, 2 * H:3 * H])
        o = jax.nn.sigmoid(gates[:, 3 * H:])
        c = f * c + i * g
        h = o * jnp.tanh(c)
        return (h, c), h

    init = (jnp.zeros((B, H), jnp.float32), jnp.zeros((B, H), jnp.float32))
    _, hs = lax.scan(step, init, jnp.swapaxes(x, 0, 1))
    return jnp.swapaxes(hs, 0, 1)


def tsae_forward_ref(params, x):
    hs = _lstm_ref(x, params["enc_wih"], params["enc_whh"], params["enc_b"])
    h_last = hs[:, -1, :]
    latent = jnp.tanh(h_last @ params["mean_w"] + params["mean_b"][0])
    hidden2 = latent @ params["l2h_w"] + params["l2h_b"][0]
    dec_in = jnp.repeat(hidden2[:, None, :], params["output_len"], axis=1)
    output = _lstm_ref(dec_in, params["dec_wih"], params["dec_whh"], params["dec_b"])
    return output, latent


# ----------------------------------------------------------------------------
# Deterministic parameter init (synthetic weights; no checkpoint loading)
# ----------------------------------------------------------------------------
def make_params(key, input_dim, hidden_dim, latent_dim, output_len):
    ks = jax.random.split(key, 10)

    def u(k, shape, scale=0.2):
        return jax.random.uniform(k, shape, jnp.float32, -scale, scale)

    return dict(
        # encoder LSTM: input_dim -> hidden_dim (weights stored pre-transposed,
        # i.e. (in, 4H), gate order i,f,g,o; combined bias b_ih + b_hh as (1, 4H))
        enc_wih=u(ks[0], (input_dim, 4 * hidden_dim)),
        enc_whh=u(ks[1], (hidden_dim, 4 * hidden_dim)),
        enc_b=u(ks[2], (1, 4 * hidden_dim)),
        # hidden_to_mean: hidden_dim -> latent_dim
        mean_w=u(ks[3], (hidden_dim, latent_dim)),
        mean_b=u(ks[4], (1, latent_dim)),
        # latent_to_hidden: latent_dim -> hidden_dim
        l2h_w=u(ks[5], (latent_dim, hidden_dim)),
        l2h_b=u(ks[6], (1, hidden_dim)),
        # decoder LSTM: hidden_dim -> input_dim
        dec_wih=u(ks[7], (hidden_dim, 4 * input_dim)),
        dec_whh=u(ks[8], (input_dim, 4 * input_dim)),
        dec_b=u(ks[9], (1, 4 * input_dim)),
        output_len=output_len,
    )


if __name__ == "__main__":
    B, T = 2, 8
    input_dim, hidden_dim, latent_dim, output_len = 4, 32, 16, 8

    key = jax.random.PRNGKey(0)
    kx, kp = jax.random.split(key)
    x = jax.random.normal(kx, (B, T, input_dim), jnp.float32)
    params = make_params(kp, input_dim, hidden_dim, latent_dim, output_len)

    output, latent = tsae_forward(params, x)
    output = jax.block_until_ready(output)
    latent = jax.block_until_ready(latent)

    out_ref, lat_ref = tsae_forward_ref(params, x)

    assert output.shape == (B, output_len, input_dim)
    assert latent.shape == (B, latent_dim)
    np.testing.assert_allclose(np.asarray(output), np.asarray(out_ref),
                               rtol=1e-5, atol=1e-5)
    np.testing.assert_allclose(np.asarray(latent), np.asarray(lat_ref),
                               rtol=1e-5, atol=1e-5)
    print("KERNEL_OK")
</pallas_src>

<mosaic_0001>
module attributes {stable_mosaic.version = 11 : i64} {
  func.func @tsae_fused_kernel(%arg0: memref<16x4xf32, #tpu.memory_space<vmem>>, %arg1: memref<4x128xf32, #tpu.memory_space<vmem>>, %arg2: memref<32x128xf32, #tpu.memory_space<vmem>>, %arg3: memref<1x128xf32, #tpu.memory_space<vmem>>, %arg4: memref<32x16xf32, #tpu.memory_space<vmem>>, %arg5: memref<1x16xf32, #tpu.memory_space<vmem>>, %arg6: memref<16x32xf32, #tpu.memory_space<vmem>>, %arg7: memref<1x32xf32, #tpu.memory_space<vmem>>, %arg8: memref<32x16xf32, #tpu.memory_space<vmem>>, %arg9: memref<4x16xf32, #tpu.memory_space<vmem>>, %arg10: memref<1x16xf32, #tpu.memory_space<vmem>>, %arg11: memref<2x32xf32, #tpu.memory_space<vmem>>, %arg12: memref<2x16xf32, #tpu.memory_space<vmem>>) attributes {dimension_semantics = [], scalar_prefetch = 0 : i64, scratch_operands = 0 : i64, tpu.core_type = #tpu.core_type<tc>} {
    %0 = tpu.iota {dimensions = array<i32: 1>} : vector<2x128xi32>
    %c64_i32 = arith.constant 64 : i32
    %1 = vector.broadcast %c64_i32 : i32 to vector<2x128xi32>
    %2 = arith.cmpi sge, %0, %1 : vector<2x128xi32>
    %c96_i32 = arith.constant 96 : i32
    %3 = vector.broadcast %c96_i32 : i32 to vector<2x128xi32>
    %4 = arith.cmpi slt, %0, %3 : vector<2x128xi32>
    %5 = arith.andi %2, %4 : vector<2x128xi1>
    %cst = arith.constant 1.000000e+00 : f32
    %cst_0 = arith.constant 5.000000e-01 : f32
    %6 = vector.broadcast %cst : f32 to vector<2x128xf32>
    %7 = vector.broadcast %cst_0 : f32 to vector<2x128xf32>
    %8 = arith.select %5, %6, %7 : vector<2x128xi1>, vector<2x128xf32>
    %cst_1 = arith.constant 0.000000e+00 : f32
    %cst_2 = arith.constant 5.000000e-01 : f32
    %9 = vector.broadcast %cst_1 : f32 to vector<2x128xf32>
    %10 = vector.broadcast %cst_2 : f32 to vector<2x128xf32>
    %11 = arith.select %5, %9, %10 : vector<2x128xi1>, vector<2x128xf32>
    %12 = tpu.iota {dimensions = array<i32: 1>} : vector<2x16xi32>
    %c8_i32 = arith.constant 8 : i32
    %13 = vector.broadcast %c8_i32 : i32 to vector<2x16xi32>
    %14 = arith.cmpi sge, %12, %13 : vector<2x16xi32>
    %c12_i32 = arith.constant 12 : i32
    %15 = vector.broadcast %c12_i32 : i32 to vector<2x16xi32>
    %16 = arith.cmpi slt, %12, %15 : vector<2x16xi32>
    %17 = arith.andi %14, %16 : vector<2x16xi1>
    %cst_3 = arith.constant 1.000000e+00 : f32
    %cst_4 = arith.constant 5.000000e-01 : f32
    %18 = vector.broadcast %cst_3 : f32 to vector<2x16xf32>
    %19 = vector.broadcast %cst_4 : f32 to vector<2x16xf32>
    %20 = arith.select %17, %18, %19 : vector<2x16xi1>, vector<2x16xf32>
    %cst_5 = arith.constant 0.000000e+00 : f32
    %cst_6 = arith.constant 5.000000e-01 : f32
    %21 = vector.broadcast %cst_5 : f32 to vector<2x16xf32>
    %22 = vector.broadcast %cst_6 : f32 to vector<2x16xf32>
    %23 = arith.select %17, %21, %22 : vector<2x16xi1>, vector<2x16xf32>
    %c0 = arith.constant 0 : index
    %c0_7 = arith.constant 0 : index
    %24 = vector.load %arg0[%c0, %c0_7] : memref<16x4xf32, #tpu.memory_space<vmem>>, vector<16x4xf32>
    %c0_8 = arith.constant 0 : index
    %c0_9 = arith.constant 0 : index
    %25 = vector.load %arg1[%c0_8, %c0_9] : memref<4x128xf32, #tpu.memory_space<vmem>>, vector<4x128xf32>
    %cst_10 = arith.constant dense<0.000000e+00> : vector<16x128xf32>
    %26 = tpu.matmul %24, %25, %cst_10 {dimension_numbers = #tpu.dot_dimension_numbers<[1], [0], [0], [1], [0, 0, 1, 1], [], []>} : vector<16x4xf32>, vector<4x128xf32>, vector<16x128xf32> -> vector<16x128xf32>
    %c0_11 = arith.constant 0 : index
    %c0_12 = arith.constant 0 : index
    %27 = vector.load %arg3[%c0_11, %c0_12] : memref<1x128xf32, #tpu.memory_space<vmem>>, vector<1x128xf32>
    %28 = vector.broadcast %27 : vector<1x128xf32> to vector<16x128xf32>
    %29 = arith.addf %26, %28 : vector<16x128xf32>
    %c0_13 = arith.constant 0 : index
    %c0_14 = arith.constant 0 : index
    %30 = vector.load %arg2[%c0_13, %c0_14] : memref<32x128xf32, #tpu.memory_space<vmem>>, vector<32x128xf32>
    %cst_15 = arith.constant 0.000000e+00 : f32
    %31 = vector.broadcast %cst_15 : f32 to vector<2x32xf32>
    %cst_16 = arith.constant 0.000000e+00 : f32
    %32 = vector.broadcast %cst_16 : f32 to vector<2x32xf32>
    %33 = vector.extract_strided_slice %29 {offsets = [0, 0], sizes = [2, 128], strides = [1, 1]} : vector<16x128xf32> to vector<2x128xf32>
    %cst_17 = arith.constant dense<0.000000e+00> : vector<2x128xf32>
    %34 = tpu.matmul %31, %30, %cst_17 {dimension_numbers = #tpu.dot_dimension_numbers<[1], [0], [0], [1], [0, 0, 1, 1], [], []>} : vector<2x32xf32>, vector<32x128xf32>, vector<2x128xf32> -> vector<2x128xf32>
    %35 = arith.addf %33, %34 : vector<2x128xf32>
    %36 = arith.mulf %35, %8 : vector<2x128xf32>
    %37 = math.tanh %36 : vector<2x128xf32>
    %38 = arith.mulf %37, %8 : vector<2x128xf32>
    %39 = arith.addf %38, %11 : vector<2x128xf32>
    %40 = vector.extract_strided_slice %39 {offsets = [0, 0], sizes = [2, 32], strides = [1, 1]} : vector<2x128xf32> to vector<2x32xf32>
    %41 = vector.extract_strided_slice %39 {offsets = [0, 32], sizes = [2, 32], strides = [1, 1]} : vector<2x128xf32> to vector<2x32xf32>
    %42 = vector.extract_strided_slice %39 {offsets = [0, 64], sizes = [2, 32], strides = [1, 1]} : vector<2x128xf32> to vector<2x32xf32>
    %43 = vector.extract_strided_slice %39 {offsets = [0, 96], sizes = [2, 32], strides = [1, 1]} : vector<2x128xf32> to vector<2x32xf32>
    %44 = arith.mulf %41, %32 : vector<2x32xf32>
    %45 = arith.mulf %40, %42 : vector<2x32xf32>
    %46 = arith.addf %44, %45 : vector<2x32xf32>
    %47 = math.tanh %46 : vector<2x32xf32>
    %48 = arith.mulf %43, %47 : vector<2x32xf32>
    %49 = vector.extract_strided_slice %29 {offsets = [2, 0], sizes = [2, 128], strides = [1, 1]} : vector<16x128xf32> to vector<2x128xf32>
    %cst_18 = arith.constant dense<0.000000e+00> : vector<2x128xf32>
    %50 = tpu.matmul %48, %30, %cst_18 {dimension_numbers = #tpu.dot_dimension_numbers<[1], [0], [0], [1], [0, 0, 1, 1], [], []>} : vector<2x32xf32>, vector<32x128xf32>, vector<2x128xf32> -> vector<2x128xf32>
    %51 = arith.addf %49, %50 : vector<2x128xf32>
    %52 = arith.mulf %51, %8 : vector<2x128xf32>
    %53 = math.tanh %52 : vector<2x128xf32>
    %54 = arith.mulf %53, %8 : vector<2x128xf32>
    %55 = arith.addf %54, %11 : vector<2x128xf32>
    %56 = vector.extract_strided_slice %55 {offsets = [0, 0], sizes = [2, 32], strides = [1, 1]} : vector<2x128xf32> to vector<2x32xf32>
    %57 = vector.extract_strided_slice %55 {offsets = [0, 32], sizes = [2, 32], strides = [1, 1]} : vector<2x128xf32> to vector<2x32xf32>
    %58 = vector.extract_strided_slice %55 {offsets = [0, 64], sizes = [2, 32], strides = [1, 1]} : vector<2x128xf32> to vector<2x32xf32>
    %59 = vector.extract_strided_slice %55 {offsets = [0, 96], sizes = [2, 32], strides = [1, 1]} : vector<2x128xf32> to vector<2x32xf32>
    %60 = arith.mulf %57, %46 : vector<2x32xf32>
    %61 = arith.mulf %56, %58 : vector<2x32xf32>
    %62 = arith.addf %60, %61 : vector<2x32xf32>
    %63 = math.tanh %62 : vector<2x32xf32>
    %64 = arith.mulf %59, %63 : vector<2x32xf32>
    %65 = vector.extract_strided_slice %29 {offsets = [4, 0], sizes = [2, 128], strides = [1, 1]} : vector<16x128xf32> to vector<2x128xf32>
    %cst_19 = arith.constant dense<0.000000e+00> : vector<2x128xf32>
    %66 = tpu.matmul %64, %30, %cst_19 {dimension_numbers = #tpu.dot_dimension_numbers<[1], [0], [0], [1], [0, 0, 1, 1], [], []>} : vector<2x32xf32>, vector<32x128xf32>, vector<2x128xf32> -> vector<2x128xf32>
    %67 = arith.addf %65, %66 : vector<2x128xf32>
    %68 = arith.mulf %67, %8 : vector<2x128xf32>
    %69 = math.tanh %68 : vector<2x128xf32>
    %70 = arith.mulf %69, %8 : vector<2x128xf32>
    %71 = arith.addf %70, %11 : vector<2x128xf32>
    %72 = vector.extract_strided_slice %71 {offsets = [0, 0], sizes = [2, 32], strides = [1, 1]} : vector<2x128xf32> to vector<2x32xf32>
    %73 = vector.extract_strided_slice %71 {offsets = [0, 32], sizes = [2, 32], strides = [1, 1]} : vector<2x128xf32> to vector<2x32xf32>
    %74 = vector.extract_strided_slice %71 {offsets = [0, 64], sizes = [2, 32], strides = [1, 1]} : vector<2x128xf32> to vector<2x32xf32>
    %75 = vector.extract_strided_slice %71 {offsets = [0, 96], sizes = [2, 32], strides = [1, 1]} : vector<2x128xf32> to vector<2x32xf32>
    %76 = arith.mulf %73, %62 : vector<2x32xf32>
    %77 = arith.mulf %72, %74 : vector<2x32xf32>
    %78 = arith.addf %76, %77 : vector<2x32xf32>
    %79 = math.tanh %78 : vector<2x32xf32>
    %80 = arith.mulf %75, %79 : vector<2x32xf32>
    %81 = vector.extract_strided_slice %29 {offsets = [6, 0], sizes = [2, 128], strides = [1, 1]} : vector<16x128xf32> to vector<2x128xf32>
    %cst_20 = arith.constant dense<0.000000e+00> : vector<2x128xf32>
    %82 = tpu.matmul %80, %30, %cst_20 {dimension_numbers = #tpu.dot_dimension_numbers<[1], [0], [0], [1], [0, 0, 1, 1], [], []>} : vector<2x32xf32>, vector<32x128xf32>, vector<2x128xf32> -> vector<2x128xf32>
    %83 = arith.addf %81, %82 : vector<2x128xf32>
    %84 = arith.mulf %83, %8 : vector<2x128xf32>
    %85 = math.tanh %84 : vector<2x128xf32>
    %86 = arith.mulf %85, %8 : vector<2x128xf32>
    %87 = arith.addf %86, %11 : vector<2x128xf32>
    %88 = vector.extract_strided_slice %87 {offsets = [0, 0], sizes = [2, 32], strides = [1, 1]} : vector<2x128xf32> to vector<2x32xf32>
    %89 = vector.extract_strided_slice %87 {offsets = [0, 32], sizes = [2, 32], strides = [1, 1]} : vector<2x128xf32> to vector<2x32xf32>
    %90 = vector.extract_strided_slice %87 {offsets = [0, 64], sizes = [2, 32], strides = [1, 1]} : vector<2x128xf32> to vector<2x32xf32>
    %91 = vector.extract_strided_slice %87 {offsets = [0, 96], sizes = [2, 32], strides = [1, 1]} : vector<2x128xf32> to vector<2x32xf32>
    %92 = arith.mulf %89, %78 : vector<2x32xf32>
    %93 = arith.mulf %88, %90 : vector<2x32xf32>
    %94 = arith.addf %92, %93 : vector<2x32xf32>
    %95 = math.tanh %94 : vector<2x32xf32>
    %96 = arith.mulf %91, %95 : vector<2x32xf32>
    %97 = vector.extract_strided_slice %29 {offsets = [8, 0], sizes = [2, 128], strides = [1, 1]} : vector<16x128xf32> to vector<2x128xf32>
    %cst_21 = arith.constant dense<0.000000e+00> : vector<2x128xf32>
    %98 = tpu.matmul %96, %30, %cst_21 {dimension_numbers = #tpu.dot_dimension_numbers<[1], [0], [0], [1], [0, 0, 1, 1], [], []>} : vector<2x32xf32>, vector<32x128xf32>, vector<2x128xf32> -> vector<2x128xf32>
    %99 = arith.addf %97, %98 : vector<2x128xf32>
    %100 = arith.mulf %99, %8 : vector<2x128xf32>
    %101 = math.tanh %100 : vector<2x128xf32>
    %102 = arith.mulf %101, %8 : vector<2x128xf32>
    %103 = arith.addf %102, %11 : vector<2x128xf32>
    %104 = vector.extract_strided_slice %103 {offsets = [0, 0], sizes = [2, 32], strides = [1, 1]} : vector<2x128xf32> to vector<2x32xf32>
    %105 = vector.extract_strided_slice %103 {offsets = [0, 32], sizes = [2, 32], strides = [1, 1]} : vector<2x128xf32> to vector<2x32xf32>
    %106 = vector.extract_strided_slice %103 {offsets = [0, 64], sizes = [2, 32], strides = [1, 1]} : vector<2x128xf32> to vector<2x32xf32>
    %107 = vector.extract_strided_slice %103 {offsets = [0, 96], sizes = [2, 32], strides = [1, 1]} : vector<2x128xf32> to vector<2x32xf32>
    %108 = arith.mulf %105, %94 : vector<2x32xf32>
    %109 = arith.mulf %104, %106 : vector<2x32xf32>
    %110 = arith.addf %108, %109 : vector<2x32xf32>
    %111 = math.tanh %110 : vector<2x32xf32>
    %112 = arith.mulf %107, %111 : vector<2x32xf32>
    %113 = vector.extract_strided_slice %29 {offsets = [10, 0], sizes = [2, 128], strides = [1, 1]} : vector<16x128xf32> to vector<2x128xf32>
    %cst_22 = arith.constant dense<0.000000e+00> : vector<2x128xf32>
    %114 = tpu.matmul %112, %30, %cst_22 {dimension_numbers = #tpu.dot_dimension_numbers<[1], [0], [0], [1], [0, 0, 1, 1], [], []>} : vector<2x32xf32>, vector<32x128xf32>, vector<2x128xf32> -> vector<2x128xf32>
    %115 = arith.addf %113, %114 : vector<2x128xf32>
    %116 = arith.mulf %115, %8 : vector<2x128xf32>
    %117 = math.tanh %116 : vector<2x128xf32>
    %118 = arith.mulf %117, %8 : vector<2x128xf32>
    %119 = arith.addf %118, %11 : vector<2x128xf32>
    %120 = vector.extract_strided_slice %119 {offsets = [0, 0], sizes = [2, 32], strides = [1, 1]} : vector<2x128xf32> to vector<2x32xf32>
    %121 = vector.extract_strided_slice %119 {offsets = [0, 32], sizes = [2, 32], strides = [1, 1]} : vector<2x128xf32> to vector<2x32xf32>
    %122 = vector.extract_strided_slice %119 {offsets = [0, 64], sizes = [2, 32], strides = [1, 1]} : vector<2x128xf32> to vector<2x32xf32>
    %123 = vector.extract_strided_slice %119 {offsets = [0, 96], sizes = [2, 32], strides = [1, 1]} : vector<2x128xf32> to vector<2x32xf32>
    %124 = arith.mulf %121, %110 : vector<2x32xf32>
    %125 = arith.mulf %120, %122 : vector<2x32xf32>
    %126 = arith.addf %124, %125 : vector<2x32xf32>
    %127 = math.tanh %126 : vector<2x32xf32>
    %128 = arith.mulf %123, %127 : vector<2x32xf32>
    %129 = vector.extract_strided_slice %29 {offsets = [12, 0], sizes = [2, 128], strides = [1, 1]} : vector<16x128xf32> to vector<2x128xf32>
    %cst_23 = arith.constant dense<0.000000e+00> : vector<2x128xf32>
    %130 = tpu.matmul %128, %30, %cst_23 {dimension_numbers = #tpu.dot_dimension_numbers<[1], [0], [0], [1], [0, 0, 1, 1], [], []>} : vector<2x32xf32>, vector<32x128xf32>, vector<2x128xf32> -> vector<2x128xf32>
    %131 = arith.addf %129, %130 : vector<2x128xf32>
    %132 = arith.mulf %131, %8 : vector<2x128xf32>
    %133 = math.tanh %132 : vector<2x128xf32>
    %134 = arith.mulf %133, %8 : vector<2x128xf32>
    %135 = arith.addf %134, %11 : vector<2x128xf32>
    %136 = vector.extract_strided_slice %135 {offsets = [0, 0], sizes = [2, 32], strides = [1, 1]} : vector<2x128xf32> to vector<2x32xf32>
    %137 = vector.extract_strided_slice %135 {offsets = [0, 32], sizes = [2, 32], strides = [1, 1]} : vector<2x128xf32> to vector<2x32xf32>
    %138 = vector.extract_strided_slice %135 {offsets = [0, 64], sizes = [2, 32], strides = [1, 1]} : vector<2x128xf32> to vector<2x32xf32>
    %139 = vector.extract_strided_slice %135 {offsets = [0, 96], sizes = [2, 32], strides = [1, 1]} : vector<2x128xf32> to vector<2x32xf32>
    %140 = arith.mulf %137, %126 : vector<2x32xf32>
    %141 = arith.mulf %136, %138 : vector<2x32xf32>
    %142 = arith.addf %140, %141 : vector<2x32xf32>
    %143 = math.tanh %142 : vector<2x32xf32>
    %144 = arith.mulf %139, %143 : vector<2x32xf32>
    %145 = vector.extract_strided_slice %29 {offsets = [14, 0], sizes = [2, 128], strides = [1, 1]} : vector<16x128xf32> to vector<2x128xf32>
    %cst_24 = arith.constant dense<0.000000e+00> : vector<2x128xf32>
    %146 = tpu.matmul %144, %30, %cst_24 {dimension_numbers = #tpu.dot_dimension_numbers<[1], [0], [0], [1], [0, 0, 1, 1], [], []>} : vector<2x32xf32>, vector<32x128xf32>, vector<2x128xf32> -> vector<2x128xf32>
    %147 = arith.addf %145, %146 : vector<2x128xf32>
    %148 = arith.mulf %147, %8 : vector<2x128xf32>
    %149 = math.tanh %148 : vector<2x128xf32>
    %150 = arith.mulf %149, %8 : vector<2x128xf32>
    %151 = arith.addf %150, %11 : vector<2x128xf32>
    %152 = vector.extract_strided_slice %151 {offsets = [0, 0], sizes = [2, 32], strides = [1, 1]} : vector<2x128xf32> to vector<2x32xf32>
    %153 = vector.extract_strided_slice %151 {offsets = [0, 32], sizes = [2, 32], strides = [1, 1]} : vector<2x128xf32> to vector<2x32xf32>
    %154 = vector.extract_strided_slice %151 {offsets = [0, 64], sizes = [2, 32], strides = [1, 1]} : vector<2x128xf32> to vector<2x32xf32>
    %155 = vector.extract_strided_slice %151 {offsets = [0, 96], sizes = [2, 32], strides = [1, 1]} : vector<2x128xf32> to vector<2x32xf32>
    %156 = arith.mulf %153, %142 : vector<2x32xf32>
    %157 = arith.mulf %152, %154 : vector<2x32xf32>
    %158 = arith.addf %156, %157 : vector<2x32xf32>
    %159 = math.tanh %158 : vector<2x32xf32>
    %160 = arith.mulf %155, %159 : vector<2x32xf32>
    %c0_25 = arith.constant 0 : index
    %c0_26 = arith.constant 0 : index
    %161 = vector.load %arg4[%c0_25, %c0_26] : memref<32x16xf32, #tpu.memory_space<vmem>>, vector<32x16xf32>
    %cst_27 = arith.constant dense<0.000000e+00> : vector<2x16xf32>
    %162 = tpu.matmul %160, %161, %cst_27 {dimension_numbers = #tpu.dot_dimension_numbers<[1], [0], [0], [1], [0, 0, 1, 1], [], []>} : vector<2x32xf32>, vector<32x16xf32>, vector<2x16xf32> -> vector<2x16xf32>
    %c0_28 = arith.constant 0 : index
    %c0_29 = arith.constant 0 : index
    %163 = vector.load %arg5[%c0_28, %c0_29] : memref<1x16xf32, #tpu.memory_space<vmem>>, vector<1x16xf32>
    %164 = vector.broadcast %163 : vector<1x16xf32> to vector<2x16xf32>
    %165 = arith.addf %162, %164 : vector<2x16xf32>
    %166 = math.tanh %165 : vector<2x16xf32>
    %c0_30 = arith.constant 0 : index
    %c0_31 = arith.constant 0 : index
    %167 = vector.load %arg12[%c0_30, %c0_31] : memref<2x16xf32, #tpu.memory_space<vmem>>, vector<2x16xf32>
    tpu.vector_store %arg12[%c0_30, %c0_31], %166 {strides = array<i32>} : memref<2x16xf32, #tpu.memory_space<vmem>>, vector<2x16xf32>,
    %c0_32 = arith.constant 0 : index
    %c0_33 = arith.constant 0 : index
    %168 = vector.load %arg6[%c0_32, %c0_33] : memref<16x32xf32, #tpu.memory_space<vmem>>, vector<16x32xf32>
    %cst_34 = arith.constant dense<0.000000e+00> : vector<2x32xf32>
    %169 = tpu.matmul %166, %168, %cst_34 {dimension_numbers = #tpu.dot_dimension_numbers<[1], [0], [0], [1], [0, 0, 1, 1], [], []>} : vector<2x16xf32>, vector<16x32xf32>, vector<2x32xf32> -> vector<2x32xf32>
    %c0_35 = arith.constant 0 : index
    %c0_36 = arith.constant 0 : index
    %170 = vector.load %arg7[%c0_35, %c0_36] : memref<1x32xf32, #tpu.memory_space<vmem>>, vector<1x32xf32>
    %171 = vector.broadcast %170 : vector<1x32xf32> to vector<2x32xf32>
    %172 = arith.addf %169, %171 : vector<2x32xf32>
    %c0_37 = arith.constant 0 : index
    %c0_38 = arith.constant 0 : index
    %173 = vector.load %arg8[%c0_37, %c0_38] : memref<32x16xf32, #tpu.memory_space<vmem>>, vector<32x16xf32>
    %cst_39 = arith.constant dense<0.000000e+00> : vector<2x16xf32>
    %174 = tpu.matmul %172, %173, %cst_39 {dimension_numbers = #tpu.dot_dimension_numbers<[1], [0], [0], [1], [0, 0, 1, 1], [], []>} : vector<2x32xf32>, vector<32x16xf32>, vector<2x16xf32> -> vector<2x16xf32>
    %c0_40 = arith.constant 0 : index
    %c0_41 = arith.constant 0 : index
    %175 = vector.load %arg10[%c0_40, %c0_41] : memref<1x16xf32, #tpu.memory_space<vmem>>, vector<1x16xf32>
    %176 = vector.broadcast %175 : vector<1x16xf32> to vector<2x16xf32>
    %177 = arith.addf %174, %176 : vector<2x16xf32>
    %c0_42 = arith.constant 0 : index
    %c0_43 = arith.constant 0 : index
    %178 = vector.load %arg9[%c0_42, %c0_43] : memref<4x16xf32, #tpu.memory_space<vmem>>, vector<4x16xf32>
    %179 = vector.extract_strided_slice %178 {offsets = [0, 0], sizes = [1, 16], strides = [1, 1]} : vector<4x16xf32> to vector<1x16xf32>
    %180 = vector.extract_strided_slice %178 {offsets = [1, 0], sizes = [1, 16], strides = [1, 1]} : vector<4x16xf32> to vector<1x16xf32>
    %181 = vector.extract_strided_slice %178 {offsets = [2, 0], sizes = [1, 16], strides = [1, 1]} : vector<4x16xf32> to vector<1x16xf32>
    %182 = vector.extract_strided_slice %178 {offsets = [3, 0], sizes = [1, 16], strides = [1, 1]} : vector<4x16xf32> to vector<1x16xf32>
    %cst_44 = arith.constant 0.000000e+00 : f32
    %183 = vector.broadcast %cst_44 : f32 to vector<2x4xf32>
    %cst_45 = arith.constant 0.000000e+00 : f32
    %184 = vector.broadcast %cst_45 : f32 to vector<2x4xf32>
    %185 = vector.extract_strided_slice %183 {offsets = [0, 0], sizes = [2, 1], strides = [1, 1]} : vector<2x4xf32> to vector<2x1xf32>
    %186 = vector.broadcast %185 : vector<2x1xf32> to vector<2x16xf32>
    %187 = vector.broadcast %179 : vector<1x16xf32> to vector<2x16xf32>
    %188 = arith.mulf %186, %187 : vector<2x16xf32>
    %189 = vector.extract_strided_slice %183 {offsets = [0, 1], sizes = [2, 1], strides = [1, 1]} : vector<2x4xf32> to vector<2x1xf32>
    %190 = vector.broadcast %189 : vector<2x1xf32> to vector<2x16xf32>
    %191 = vector.broadcast %180 : vector<1x16xf32> to vector<2x16xf32>
    %192 = arith.mulf %190, %191 : vector<2x16xf32>
    %193 = arith.addf %188, %192 : vector<2x16xf32>
    %194 = vector.extract_strided_slice %183 {offsets = [0, 2], sizes = [2, 1], strides = [1, 1]} : vector<2x4xf32> to vector<2x1xf32>
    %195 = vector.broadcast %194 : vector<2x1xf32> to vector<2x16xf32>
    %196 = vector.broadcast %181 : vector<1x16xf32> to vector<2x16xf32>
    %197 = arith.mulf %195, %196 : vector<2x16xf32>
    %198 = arith.addf %193, %197 : vector<2x16xf32>
    %199 = vector.extract_strided_slice %183 {offsets = [0, 3], sizes = [2, 1], strides = [1, 1]} : vector<2x4xf32> to vector<2x1xf32>
    %200 = vector.broadcast %199 : vector<2x1xf32> to vector<2x16xf32>
    %201 = vector.broadcast %182 : vector<1x16xf32> to vector<2x16xf32>
    %202 = arith.mulf %200, %201 : vector<2x16xf32>
    %203 = arith.addf %198, %202 : vector<2x16xf32>
    %204 = arith.addf %177, %203 : vector<2x16xf32>
    %205 = arith.mulf %204, %20 : vector<2x16xf32>
    %206 = math.tanh %205 : vector<2x16xf32>
    %207 = arith.mulf %206, %20 : vector<2x16xf32>
    %208 = arith.addf %207, %23 : vector<2x16xf32>
    %209 = vector.extract_strided_slice %208 {offsets = [0, 0], sizes = [2, 4], strides = [1, 1]} : vector<2x16xf32> to vector<2x4xf32>
    %210 = vector.extract_strided_slice %208 {offsets = [0, 4], sizes = [2, 4], strides = [1, 1]} : vector<2x16xf32> to vector<2x4xf32>
    %211 = vector.extract_strided_slice %208 {offsets = [0, 8], sizes = [2, 4], strides = [1, 1]} : vector<2x16xf32> to vector<2x4xf32>
    %212 = vector.extract_strided_slice %208 {offsets = [0, 12], sizes = [2, 4], strides = [1, 1]} : vector<2x16xf32> to vector<2x4xf32>
    %213 = arith.mulf %210, %184 : vector<2x4xf32>
    %214 = arith.mulf %209, %211 : vector<2x4xf32>
    %215 = arith.addf %213, %214 : vector<2x4xf32>
    %216 = math.tanh %215 : vector<2x4xf32>
    %217 = arith.mulf %212, %216 : vector<2x4xf32>
    %c0_46 = arith.constant 0 : index
    %c0_47 = arith.constant 0 : index
    %218 = vector.load %arg11[%c0_46, %c0_47] : memref<2x32xf32, #tpu.memory_space<vmem>>, vector<2x4xf32>
    tpu.vector_store %arg11[%c0_46, %c0_47], %217 {strides = array<i32>} : memref<2x32xf32, #tpu.memory_space<vmem>>, vector<2x4xf32>,
    %219 = vector.extract_strided_slice %217 {offsets = [0, 0], sizes = [2, 1], strides = [1, 1]} : vector<2x4xf32> to vector<2x1xf32>
    %220 = vector.broadcast %219 : vector<2x1xf32> to vector<2x16xf32>
    %221 = vector.broadcast %179 : vector<1x16xf32> to vector<2x16xf32>
    %222 = arith.mulf %220, %221 : vector<2x16xf32>
    %223 = vector.extract_strided_slice %217 {offsets = [0, 1], sizes = [2, 1], strides = [1, 1]} : vector<2x4xf32> to vector<2x1xf32>
    %224 = vector.broadcast %223 : vector<2x1xf32> to vector<2x16xf32>
    %225 = vector.broadcast %180 : vector<1x16xf32> to vector<2x16xf32>
    %226 = arith.mulf %224, %225 : vector<2x16xf32>
    %227 = arith.addf %222, %226 : vector<2x16xf32>
    %228 = vector.extract_strided_slice %217 {offsets = [0, 2], sizes = [2, 1], strides = [1, 1]} : vector<2x4xf32> to vector<2x1xf32>
    %229 = vector.broadcast %228 : vector<2x1xf32> to vector<2x16xf32>
    %230 = vector.broadcast %181 : vector<1x16xf32> to vector<2x16xf32>
    %231 = arith.mulf %229, %230 : vector<2x16xf32>
    %232 = arith.addf %227, %231 : vector<2x16xf32>
    %233 = vector.extract_strided_slice %217 {offsets = [0, 3], sizes = [2, 1], strides = [1, 1]} : vector<2x4xf32> to vector<2x1xf32>
    %234 = vector.broadcast %233 : vector<2x1xf32> to vector<2x16xf32>
    %235 = vector.broadcast %182 : vector<1x16xf32> to vector<2x16xf32>
    %236 = arith.mulf %234, %235 : vector<2x16xf32>
    %237 = arith.addf %232, %236 : vector<2x16xf32>
    %238 = arith.addf %177, %237 : vector<2x16xf32>
    %239 = arith.mulf %238, %20 : vector<2x16xf32>
    %240 = math.tanh %239 : vector<2x16xf32>
    %241 = arith.mulf %240, %20 : vector<2x16xf32>
    %242 = arith.addf %241, %23 : vector<2x16xf32>
    %243 = vector.extract_strided_slice %242 {offsets = [0, 0], sizes = [2, 4], strides = [1, 1]} : vector<2x16xf32> to vector<2x4xf32>
    %244 = vector.extract_strided_slice %242 {offsets = [0, 4], sizes = [2, 4], strides = [1, 1]} : vector<2x16xf32> to vector<2x4xf32>
    %245 = vector.extract_strided_slice %242 {offsets = [0, 8], sizes = [2, 4], strides = [1, 1]} : vector<2x16xf32> to vector<2x4xf32>
    %246 = vector.extract_strided_slice %242 {offsets = [0, 12], sizes = [2, 4], strides = [1, 1]} : vector<2x16xf32> to vector<2x4xf32>
    %247 = arith.mulf %244, %215 : vector<2x4xf32>
    %248 = arith.mulf %243, %245 : vector<2x4xf32>
    %249 = arith.addf %247, %248 : vector<2x4xf32>
    %250 = math.tanh %249 : vector<2x4xf32>
    %251 = arith.mulf %246, %250 : vector<2x4xf32>
    %c0_48 = arith.constant 0 : index
    %c4 = arith.constant 4 : index
    %252 = vector.load %arg11[%c0_48, %c4] : memref<2x32xf32, #tpu.memory_space<vmem>>, vector<2x4xf32>
    tpu.vector_store %arg11[%c0_48, %c4], %251 {strides = array<i32>} : memref<2x32xf32, #tpu.memory_space<vmem>>, vector<2x4xf32>,
    %253 = vector.extract_strided_slice %251 {offsets = [0, 0], sizes = [2, 1], strides = [1, 1]} : vector<2x4xf32> to vector<2x1xf32>
    %254 = vector.broadcast %253 : vector<2x1xf32> to vector<2x16xf32>
    %255 = vector.broadcast %179 : vector<1x16xf32> to vector<2x16xf32>
    %256 = arith.mulf %254, %255 : vector<2x16xf32>
    %257 = vector.extract_strided_slice %251 {offsets = [0, 1], sizes = [2, 1], strides = [1, 1]} : vector<2x4xf32> to vector<2x1xf32>
    %258 = vector.broadcast %257 : vector<2x1xf32> to vector<2x16xf32>
    %259 = vector.broadcast %180 : vector<1x16xf32> to vector<2x16xf32>
    %260 = arith.mulf %258, %259 : vector<2x16xf32>
    %261 = arith.addf %256, %260 : vector<2x16xf32>
    %262 = vector.extract_strided_slice %251 {offsets = [0, 2], sizes = [2, 1], strides = [1, 1]} : vector<2x4xf32> to vector<2x1xf32>
    %263 = vector.broadcast %262 : vector<2x1xf32> to vector<2x16xf32>
    %264 = vector.broadcast %181 : vector<1x16xf32> to vector<2x16xf32>
    %265 = arith.mulf %263, %264 : vector<2x16xf32>
    %266 = arith.addf %261, %265 : vector<2x16xf32>
    %267 = vector.extract_strided_slice %251 {offsets = [0, 3], sizes = [2, 1], strides = [1, 1]} : vector<2x4xf32> to vector<2x1xf32>
    %268 = vector.broadcast %267 : vector<2x1xf32> to vector<2x16xf32>
    %269 = vector.broadcast %182 : vector<1x16xf32> to vector<2x16xf32>
    %270 = arith.mulf %268, %269 : vector<2x16xf32>
    %271 = arith.addf %266, %270 : vector<2x16xf32>
    %272 = arith.addf %177, %271 : vector<2x16xf32>
    %273 = arith.mulf %272, %20 : vector<2x16xf32>
    %274 = math.tanh %273 : vector<2x16xf32>
    %275 = arith.mulf %274, %20 : vector<2x16xf32>
    %276 = arith.addf %275, %23 : vector<2x16xf32>
    %277 = vector.extract_strided_slice %276 {offsets = [0, 0], sizes = [2, 4], strides = [1, 1]} : vector<2x16xf32> to vector<2x4xf32>
    %278 = vector.extract_strided_slice %276 {offsets = [0, 4], sizes = [2, 4], strides = [1, 1]} : vector<2x16xf32> to vector<2x4xf32>
    %279 = vector.extract_strided_slice %276 {offsets = [0, 8], sizes = [2, 4], strides = [1, 1]} : vector<2x16xf32> to vector<2x4xf32>
    %280 = vector.extract_strided_slice %276 {offsets = [0, 12], sizes = [2, 4], strides = [1, 1]} : vector<2x16xf32> to vector<2x4xf32>
    %281 = arith.mulf %278, %249 : vector<2x4xf32>
    %282 = arith.mulf %277, %279 : vector<2x4xf32>
    %283 = arith.addf %281, %282 : vector<2x4xf32>
    %284 = math.tanh %283 : vector<2x4xf32>
    %285 = arith.mulf %280, %284 : vector<2x4xf32>
    %c0_49 = arith.constant 0 : index
    %c8 = arith.constant 8 : index
    %286 = vector.load %arg11[%c0_49, %c8] : memref<2x32xf32, #tpu.memory_space<vmem>>, vector<2x4xf32>
    tpu.vector_store %arg11[%c0_49, %c8], %285 {strides = array<i32>} : memref<2x32xf32, #tpu.memory_space<vmem>>, vector<2x4xf32>,
    %287 = vector.extract_strided_slice %285 {offsets = [0, 0], sizes = [2, 1], strides = [1, 1]} : vector<2x4xf32> to vector<2x1xf32>
    %288 = vector.broadcast %287 : vector<2x1xf32> to vector<2x16xf32>
    %289 = vector.broadcast %179 : vector<1x16xf32> to vector<2x16xf32>
    %290 = arith.mulf %288, %289 : vector<2x16xf32>
    %291 = vector.extract_strided_slice %285 {offsets = [0, 1], sizes = [2, 1], strides = [1, 1]} : vector<2x4xf32> to vector<2x1xf32>
    %292 = vector.broadcast %291 : vector<2x1xf32> to vector<2x16xf32>
    %293 = vector.broadcast %180 : vector<1x16xf32> to vector<2x16xf32>
    %294 = arith.mulf %292, %293 : vector<2x16xf32>
    %295 = arith.addf %290, %294 : vector<2x16xf32>
    %296 = vector.extract_strided_slice %285 {offsets = [0, 2], sizes = [2, 1], strides = [1, 1]} : vector<2x4xf32> to vector<2x1xf32>
    %297 = vector.broadcast %296 : vector<2x1xf32> to vector<2x16xf32>
    %298 = vector.broadcast %181 : vector<1x16xf32> to vector<2x16xf32>
    %299 = arith.mulf %297, %298 : vector<2x16xf32>
    %300 = arith.addf %295, %299 : vector<2x16xf32>
    %301 = vector.extract_strided_slice %285 {offsets = [0, 3], sizes = [2, 1], strides = [1, 1]} : vector<2x4xf32> to vector<2x1xf32>
    %302 = vector.broadcast %301 : vector<2x1xf32> to vector<2x16xf32>
    %303 = vector.broadcast %182 : vector<1x16xf32> to vector<2x16xf32>
    %304 = arith.mulf %302, %303 : vector<2x16xf32>
    %305 = arith.addf %300, %304 : vector<2x16xf32>
    %306 = arith.addf %177, %305 : vector<2x16xf32>
    %307 = arith.mulf %306, %20 : vector<2x16xf32>
    %308 = math.tanh %307 : vector<2x16xf32>
    %309 = arith.mulf %308, %20 : vector<2x16xf32>
    %310 = arith.addf %309, %23 : vector<2x16xf32>
    %311 = vector.extract_strided_slice %310 {offsets = [0, 0], sizes = [2, 4], strides = [1, 1]} : vector<2x16xf32> to vector<2x4xf32>
    %312 = vector.extract_strided_slice %310 {offsets = [0, 4], sizes = [2, 4], strides = [1, 1]} : vector<2x16xf32> to vector<2x4xf32>
    %313 = vector.extract_strided_slice %310 {offsets = [0, 8], sizes = [2, 4], strides = [1, 1]} : vector<2x16xf32> to vector<2x4xf32>
    %314 = vector.extract_strided_slice %310 {offsets = [0, 12], sizes = [2, 4], strides = [1, 1]} : vector<2x16xf32> to vector<2x4xf32>
    %315 = arith.mulf %312, %283 : vector<2x4xf32>
    %316 = arith.mulf %311, %313 : vector<2x4xf32>
    %317 = arith.addf %315, %316 : vector<2x4xf32>
    %318 = math.tanh %317 : vector<2x4xf32>
    %319 = arith.mulf %314, %318 : vector<2x4xf32>
    %c0_50 = arith.constant 0 : index
    %c12 = arith.constant 12 : index
    %320 = vector.load %arg11[%c0_50, %c12] : memref<2x32xf32, #tpu.memory_space<vmem>>, vector<2x4xf32>
    tpu.vector_store %arg11[%c0_50, %c12], %319 {strides = array<i32>} : memref<2x32xf32, #tpu.memory_space<vmem>>, vector<2x4xf32>,
    %321 = vector.extract_strided_slice %319 {offsets = [0, 0], sizes = [2, 1], strides = [1, 1]} : vector<2x4xf32> to vector<2x1xf32>
    %322 = vector.broadcast %321 : vector<2x1xf32> to vector<2x16xf32>
    %323 = vector.broadcast %179 : vector<1x16xf32> to vector<2x16xf32>
    %324 = arith.mulf %322, %323 : vector<2x16xf32>
    %325 = vector.extract_strided_slice %319 {offsets = [0, 1], sizes = [2, 1], strides = [1, 1]} : vector<2x4xf32> to vector<2x1xf32>
    %326 = vector.broadcast %325 : vector<2x1xf32> to vector<2x16xf32>
    %327 = vector.broadcast %180 : vector<1x16xf32> to vector<2x16xf32>
    %328 = arith.mulf %326, %327 : vector<2x16xf32>
    %329 = arith.addf %324, %328 : vector<2x16xf32>
    %330 = vector.extract_strided_slice %319 {offsets = [0, 2], sizes = [2, 1], strides = [1, 1]} : vector<2x4xf32> to vector<2x1xf32>
    %331 = vector.broadcast %330 : vector<2x1xf32> to vector<2x16xf32>
    %332 = vector.broadcast %181 : vector<1x16xf32> to vector<2x16xf32>
    %333 = arith.mulf %331, %332 : vector<2x16xf32>
    %334 = arith.addf %329, %333 : vector<2x16xf32>
    %335 = vector.extract_strided_slice %319 {offsets = [0, 3], sizes = [2, 1], strides = [1, 1]} : vector<2x4xf32> to vector<2x1xf32>
    %336 = vector.broadcast %335 : vector<2x1xf32> to vector<2x16xf32>
    %337 = vector.broadcast %182 : vector<1x16xf32> to vector<2x16xf32>
    %338 = arith.mulf %336, %337 : vector<2x16xf32>
    %339 = arith.addf %334, %338 : vector<2x16xf32>
    %340 = arith.addf %177, %339 : vector<2x16xf32>
    %341 = arith.mulf %340, %20 : vector<2x16xf32>
    %342 = math.tanh %341 : vector<2x16xf32>
    %343 = arith.mulf %342, %20 : vector<2x16xf32>
    %344 = arith.addf %343, %23 : vector<2x16xf32>
    %345 = vector.extract_strided_slice %344 {offsets = [0, 0], sizes = [2, 4], strides = [1, 1]} : vector<2x16xf32> to vector<2x4xf32>
    %346 = vector.extract_strided_slice %344 {offsets = [0, 4], sizes = [2, 4], strides = [1, 1]} : vector<2x16xf32> to vector<2x4xf32>
    %347 = vector.extract_strided_slice %344 {offsets = [0, 8], sizes = [2, 4], strides = [1, 1]} : vector<2x16xf32> to vector<2x4xf32>
    %348 = vector.extract_strided_slice %344 {offsets = [0, 12], sizes = [2, 4], strides = [1, 1]} : vector<2x16xf32> to vector<2x4xf32>
    %349 = arith.mulf %346, %317 : vector<2x4xf32>
    %350 = arith.mulf %345, %347 : vector<2x4xf32>
    %351 = arith.addf %349, %350 : vector<2x4xf32>
    %352 = math.tanh %351 : vector<2x4xf32>
    %353 = arith.mulf %348, %352 : vector<2x4xf32>
    %c0_51 = arith.constant 0 : index
    %c16 = arith.constant 16 : index
    %354 = vector.load %arg11[%c0_51, %c16] : memref<2x32xf32, #tpu.memory_space<vmem>>, vector<2x4xf32>
    tpu.vector_store %arg11[%c0_51, %c16], %353 {strides = array<i32>} : memref<2x32xf32, #tpu.memory_space<vmem>>, vector<2x4xf32>,
    %355 = vector.extract_strided_slice %353 {offsets = [0, 0], sizes = [2, 1], strides = [1, 1]} : vector<2x4xf32> to vector<2x1xf32>
    %356 = vector.broadcast %355 : vector<2x1xf32> to vector<2x16xf32>
    %357 = vector.broadcast %179 : vector<1x16xf32> to vector<2x16xf32>
    %358 = arith.mulf %356, %357 : vector<2x16xf32>
    %359 = vector.extract_strided_slice %353 {offsets = [0, 1], sizes = [2, 1], strides = [1, 1]} : vector<2x4xf32> to vector<2x1xf32>
    %360 = vector.broadcast %359 : vector<2x1xf32> to vector<2x16xf32>
    %361 = vector.broadcast %180 : vector<1x16xf32> to vector<2x16xf32>
    %362 = arith.mulf %360, %361 : vector<2x16xf32>
    %363 = arith.addf %358, %362 : vector<2x16xf32>
    %364 = vector.extract_strided_slice %353 {offsets = [0, 2], sizes = [2, 1], strides = [1, 1]} : vector<2x4xf32> to vector<2x1xf32>
    %365 = vector.broadcast %364 : vector<2x1xf32> to vector<2x16xf32>
    %366 = vector.broadcast %181 : vector<1x16xf32> to vector<2x16xf32>
    %367 = arith.mulf %365, %366 : vector<2x16xf32>
    %368 = arith.addf %363, %367 : vector<2x16xf32>
    %369 = vector.extract_strided_slice %353 {offsets = [0, 3], sizes = [2, 1], strides = [1, 1]} : vector<2x4xf32> to vector<2x1xf32>
    %370 = vector.broadcast %369 : vector<2x1xf32> to vector<2x16xf32>
    %371 = vector.broadcast %182 : vector<1x16xf32> to vector<2x16xf32>
    %372 = arith.mulf %370, %371 : vector<2x16xf32>
    %373 = arith.addf %368, %372 : vector<2x16xf32>
    %374 = arith.addf %177, %373 : vector<2x16xf32>
    %375 = arith.mulf %374, %20 : vector<2x16xf32>
    %376 = math.tanh %375 : vector<2x16xf32>
    %377 = arith.mulf %376, %20 : vector<2x16xf32>
    %378 = arith.addf %377, %23 : vector<2x16xf32>
    %379 = vector.extract_strided_slice %378 {offsets = [0, 0], sizes = [2, 4], strides = [1, 1]} : vector<2x16xf32> to vector<2x4xf32>
    %380 = vector.extract_strided_slice %378 {offsets = [0, 4], sizes = [2, 4], strides = [1, 1]} : vector<2x16xf32> to vector<2x4xf32>
    %381 = vector.extract_strided_slice %378 {offsets = [0, 8], sizes = [2, 4], strides = [1, 1]} : vector<2x16xf32> to vector<2x4xf32>
    %382 = vector.extract_strided_slice %378 {offsets = [0, 12], sizes = [2, 4], strides = [1, 1]} : vector<2x16xf32> to vector<2x4xf32>
    %383 = arith.mulf %380, %351 : vector<2x4xf32>
    %384 = arith.mulf %379, %381 : vector<2x4xf32>
    %385 = arith.addf %383, %384 : vector<2x4xf32>
    %386 = math.tanh %385 : vector<2x4xf32>
    %387 = arith.mulf %382, %386 : vector<2x4xf32>
    %c0_52 = arith.constant 0 : index
    %c20 = arith.constant 20 : index
    %388 = vector.load %arg11[%c0_52, %c20] : memref<2x32xf32, #tpu.memory_space<vmem>>, vector<2x4xf32>
    tpu.vector_store %arg11[%c0_52, %c20], %387 {strides = array<i32>} : memref<2x32xf32, #tpu.memory_space<vmem>>, vector<2x4xf32>,
    %389 = vector.extract_strided_slice %387 {offsets = [0, 0], sizes = [2, 1], strides = [1, 1]} : vector<2x4xf32> to vector<2x1xf32>
    %390 = vector.broadcast %389 : vector<2x1xf32> to vector<2x16xf32>
    %391 = vector.broadcast %179 : vector<1x16xf32> to vector<2x16xf32>
    %392 = arith.mulf %390, %391 : vector<2x16xf32>
    %393 = vector.extract_strided_slice %387 {offsets = [0, 1], sizes = [2, 1], strides = [1, 1]} : vector<2x4xf32> to vector<2x1xf32>
    %394 = vector.broadcast %393 : vector<2x1xf32> to vector<2x16xf32>
    %395 = vector.broadcast %180 : vector<1x16xf32> to vector<2x16xf32>
    %396 = arith.mulf %394, %395 : vector<2x16xf32>
    %397 = arith.addf %392, %396 : vector<2x16xf32>
    %398 = vector.extract_strided_slice %387 {offsets = [0, 2], sizes = [2, 1], strides = [1, 1]} : vector<2x4xf32> to vector<2x1xf32>
    %399 = vector.broadcast %398 : vector<2x1xf32> to vector<2x16xf32>
    %400 = vector.broadcast %181 : vector<1x16xf32> to vector<2x16xf32>
    %401 = arith.mulf %399, %400 : vector<2x16xf32>
    %402 = arith.addf %397, %401 : vector<2x16xf32>
    %403 = vector.extract_strided_slice %387 {offsets = [0, 3], sizes = [2, 1], strides = [1, 1]} : vector<2x4xf32> to vector<2x1xf32>
    %404 = vector.broadcast %403 : vector<2x1xf32> to vector<2x16xf32>
    %405 = vector.broadcast %182 : vector<1x16xf32> to vector<2x16xf32>
    %406 = arith.mulf %404, %405 : vector<2x16xf32>
    %407 = arith.addf %402, %406 : vector<2x16xf32>
    %408 = arith.addf %177, %407 : vector<2x16xf32>
    %409 = arith.mulf %408, %20 : vector<2x16xf32>
    %410 = math.tanh %409 : vector<2x16xf32>
    %411 = arith.mulf %410, %20 : vector<2x16xf32>
    %412 = arith.addf %411, %23 : vector<2x16xf32>
    %413 = vector.extract_strided_slice %412 {offsets = [0, 0], sizes = [2, 4], strides = [1, 1]} : vector<2x16xf32> to vector<2x4xf32>
    %414 = vector.extract_strided_slice %412 {offsets = [0, 4], sizes = [2, 4], strides = [1, 1]} : vector<2x16xf32> to vector<2x4xf32>
    %415 = vector.extract_strided_slice %412 {offsets = [0, 8], sizes = [2, 4], strides = [1, 1]} : vector<2x16xf32> to vector<2x4xf32>
    %416 = vector.extract_strided_slice %412 {offsets = [0, 12], sizes = [2, 4], strides = [1, 1]} : vector<2x16xf32> to vector<2x4xf32>
    %417 = arith.mulf %414, %385 : vector<2x4xf32>
    %418 = arith.mulf %413, %415 : vector<2x4xf32>
    %419 = arith.addf %417, %418 : vector<2x4xf32>
    %420 = math.tanh %419 : vector<2x4xf32>
    %421 = arith.mulf %416, %420 : vector<2x4xf32>
    %c0_53 = arith.constant 0 : index
    %c24 = arith.constant 24 : index
    %422 = vector.load %arg11[%c0_53, %c24] : memref<2x32xf32, #tpu.memory_space<vmem>>, vector<2x4xf32>
    tpu.vector_store %arg11[%c0_53, %c24], %421 {strides = array<i32>} : memref<2x32xf32, #tpu.memory_space<vmem>>, vector<2x4xf32>,
    %423 = vector.extract_strided_slice %421 {offsets = [0, 0], sizes = [2, 1], strides = [1, 1]} : vector<2x4xf32> to vector<2x1xf32>
    %424 = vector.broadcast %423 : vector<2x1xf32> to vector<2x16xf32>
    %425 = vector.broadcast %179 : vector<1x16xf32> to vector<2x16xf32>
    %426 = arith.mulf %424, %425 : vector<2x16xf32>
    %427 = vector.extract_strided_slice %421 {offsets = [0, 1], sizes = [2, 1], strides = [1, 1]} : vector<2x4xf32> to vector<2x1xf32>
    %428 = vector.broadcast %427 : vector<2x1xf32> to vector<2x16xf32>
    %429 = vector.broadcast %180 : vector<1x16xf32> to vector<2x16xf32>
    %430 = arith.mulf %428, %429 : vector<2x16xf32>
    %431 = arith.addf %426, %430 : vector<2x16xf32>
    %432 = vector.extract_strided_slice %421 {offsets = [0, 2], sizes = [2, 1], strides = [1, 1]} : vector<2x4xf32> to vector<2x1xf32>
    %433 = vector.broadcast %432 : vector<2x1xf32> to vector<2x16xf32>
    %434 = vector.broadcast %181 : vector<1x16xf32> to vector<2x16xf32>
    %435 = arith.mulf %433, %434 : vector<2x16xf32>
    %436 = arith.addf %431, %435 : vector<2x16xf32>
    %437 = vector.extract_strided_slice %421 {offsets = [0, 3], sizes = [2, 1], strides = [1, 1]} : vector<2x4xf32> to vector<2x1xf32>
    %438 = vector.broadcast %437 : vector<2x1xf32> to vector<2x16xf32>
    %439 = vector.broadcast %182 : vector<1x16xf32> to vector<2x16xf32>
    %440 = arith.mulf %438, %439 : vector<2x16xf32>
    %441 = arith.addf %436, %440 : vector<2x16xf32>
    %442 = arith.addf %177, %441 : vector<2x16xf32>
    %443 = arith.mulf %442, %20 : vector<2x16xf32>
    %444 = math.tanh %443 : vector<2x16xf32>
    %445 = arith.mulf %444, %20 : vector<2x16xf32>
    %446 = arith.addf %445, %23 : vector<2x16xf32>
    %447 = vector.extract_strided_slice %446 {offsets = [0, 0], sizes = [2, 4], strides = [1, 1]} : vector<2x16xf32> to vector<2x4xf32>
    %448 = vector.extract_strided_slice %446 {offsets = [0, 4], sizes = [2, 4], strides = [1, 1]} : vector<2x16xf32> to vector<2x4xf32>
    %449 = vector.extract_strided_slice %446 {offsets = [0, 8], sizes = [2, 4], strides = [1, 1]} : vector<2x16xf32> to vector<2x4xf32>
    %450 = vector.extract_strided_slice %446 {offsets = [0, 12], sizes = [2, 4], strides = [1, 1]} : vector<2x16xf32> to vector<2x4xf32>
    %451 = arith.mulf %448, %419 : vector<2x4xf32>
    %452 = arith.mulf %447, %449 : vector<2x4xf32>
    %453 = arith.addf %451, %452 : vector<2x4xf32>
    %454 = math.tanh %453 : vector<2x4xf32>
    %455 = arith.mulf %450, %454 : vector<2x4xf32>
    %c0_54 = arith.constant 0 : index
    %c28 = arith.constant 28 : index
    %456 = vector.load %arg11[%c0_54, %c28] : memref<2x32xf32, #tpu.memory_space<vmem>>, vector<2x4xf32>
    tpu.vector_store %arg11[%c0_54, %c28], %455 {strides = array<i32>} : memref<2x32xf32, #tpu.memory_space<vmem>>, vector<2x4xf32>,
    return
  }
}

</mosaic_0001>

<bundles_post_ra>
// kernel: tpu_custom_call.1
= control target key start
LH: loop header
LB: loop body
LE: loop exit
PB: predicated region body
PF: predicated region fallthrough
CT: control target
= control target key end

     0   :  { %18 = vsyncpa [#allocation3], 0  ;;  %vm71_vm0 = vcmask 1043456   ;;  %vm64_vm1 = vcmask 31744   ;;  %v2081_v8 = vmov 0.0|0.0   ;;  %s2585_s0 = inlined_call_operand.vmem [shape: f32[16,4], index: 0, kind: input, shape index: {}]   ;;  %s2586_s1 = inlined_call_operand.vmem [shape: f32[4,128], index: 1, kind: input, shape index: {}]   ;;  %s2587_s2 = inlined_call_operand.vmem [shape: f32[32,128], index: 2, kind: input, shape index: {}]   ;;  %s2588_s3 = inlined_call_operand.vmem [shape: f32[1,128], index: 3, kind: input, shape index: {}]   ;;  %s2589_s4 = inlined_call_operand.vmem [shape: f32[32,16], index: 4, kind: input, shape index: {}]   ;;  %s2590_s5 = inlined_call_operand.vmem [shape: f32[1,16], index: 5, kind: input, shape index: {}]   ;;  %s2591_s6 = inlined_call_operand.vmem [shape: f32[16,32], index: 6, kind: input, shape index: {}]   ;;  %s2592_s7 = inlined_call_operand.vmem [shape: f32[1,32], index: 7, kind: input, shape index: {}]   ;;  %s2593_s8 = inlined_call_operand.vmem [shape: f32[32,16], index: 8, kind: input, shape index: {}]   ;;  %s2594_s9 = inlined_call_operand.vmem [shape: f32[4,16], index: 9, kind: input, shape index: {}]   ;;  %s2595_s10 = inlined_call_operand.vmem [shape: f32[1,16], index: 10, kind: input, shape index: {}]   ;;  %s2596_s11 = inlined_call_operand.hbm [shape: f32[2,32], index: 11, kind: output, shape index: {0}]   ;;  %s2597_s12 = inlined_call_operand.hbm [shape: f32[2,16], index: 12, kind: output, shape index: {1}]  }
   0x1   :  { %v56_v0 = vld [vmem:[%s2586_s1] sm:$0xf]  ;;  %v55_v2 = vld [vmem:[%s2585_s0 + $0x8] sm:$0xff]  ;;  %v152_v5 = vld [vmem:[%s2587_s2 + $0x10] sm:$0xff]  ;;  %1865 = vmatprep.subr.bf16.mxu0 %v2081_v8 }
   0x2   :  { %v54_v1 = vld [vmem:[%s2585_s0] sm:$0xff]  ;;  %1737 = vmatprep.subr.msk.mxu1 %vm71_vm0, %v56_v0  ;;  %v151_v4 = vld [vmem:[%s2587_s2 + $0x8] sm:$0xff]  ;;  %v153_v7 = vld [vmem:[%s2587_s2 + $0x18] sm:$0xff] }
   0x3   :  { %1739 = vmatprep.mubr.msk.f32.mxu1 %vm64_vm1, %v54_v1  ;;  %v150_v3 = vld [vmem:[%s2587_s2] sm:$0xff]  ;;  %1738 = vmatpush3.msk.msra.mxu1 %vm71_vm0, %v56_v0 }
   0x4   :  { %v2183_v6 = vpack.c.bf16 %v151_v4, %v150_v3 }
   0x5   :  { %19 = vsyncpa [#allocation5], 0  ;;  %1740 = vmatmul.mubr.msk.f32.vlgmr.msra.gmra.mrb[0].mxu1 %vm64_vm1, %v55_v2  ;;  %1859 = vmatprep.subr.bf16.mxu1 %v2081_v8  ;;  %v2191_v9 = vpack.c.bf16 %v153_v7, %v152_v5  ;;  %vm2082_vm2 = vmmov 0   ;;  %v2083_v10 = vmov 0.0   ;;  %v42_v11 = vlaneseq  ;;  %v1664_v12 = vld [vmem:[%s2588_s3] ss:$0 sm:$0xff] }
   0x6   :  { %1861 = vmatpush3.bf16.msra.mxu1 %v2183_v6  ;;  %1750 = vmatprep.mubr.msk.f32.mxu1 %vm2082_vm2, %v2083_v10  ;;  %v2084_v18 = vmov 0.5   ;;  %s2085_s3 = smov 64   ;;  %s2086_s16 = smov 32   ;;  %vm154_vm6 = vcmask 261120   ;;  %vm1072_vm7 = vcmask 130048   ;;  %vm1061_vm8 = vcmask 123904  }
   0x7   :  { %1862 = vmatprep.subr.bf16.mxu1 %v2081_v8  ;;  %1867 = vmatpush3.bf16.msra.mxu0 %v2183_v6  ;;  %v2215_v13 = vand.u32 127, %v42_v11  ;;  %s2091_s18 = smov 8   ;;  %s2094_s19 = smov 116   ;;  %vm1280_vm12 = vcmask 25600  }
   0x8   :  { %1868 = vmatprep.subr.bf16.mxu0 %v2081_v8  ;;  %1761 = vmatprep.mubr.msk.f32.mxu0 %vm2082_vm2, %v2083_v10  ;;  %s2095_s20 = smov 124   ;;  %s2096_s21 = smov 12  }
   0x9   :  { %vm44_vm3 = vcmp.ge.s32.totalorder %v2215_v13, 64  ;;  %vm45_vm4 = vcmp.lt.s32.totalorder %v2215_v13, 96  ;;  %vm49_vm9 = vcmp.ge.s32.totalorder %v2215_v13, 8  ;;  %vm50_vm10 = vcmp.lt.s32.totalorder %v2215_v13, 12  ;;  %s2097_s22 = smov [#allocation4]  }
   0xa   :  { %1864 = vmatpush3.bf16.msra.mxu1 %v2191_v9  ;;  %vm46_vm5 = vmand %vm44_vm3, %vm45_vm4  ;;  %s1652_s23 = sshll.u32 %s2097_s22, 4  ;;  %s1653_s23 = int_to_ptr.vmem [resolvable:$true] %s1652_s23 }
   0xb   :  { %1870 = vmatpush3.bf16.msra.mxu0 %v2191_v9  ;;  %1871 = vmatprep.subr.bf16.mxu1 %v2081_v8  ;;  %v2224_v19 = vsel %vm46_vm5, 1.0, %v2084_v18  ;;  %v2229_v25 = vsel %vm46_vm5, 0.0, %v2084_v18  ;;  %vm51_vm11 = vmand %vm49_vm9, %vm50_vm10  ;;  %s2033_s24 = scalar_lea.vmem %s1653_s23, 32  ;;  %p2038_p1 = scmp.lt.s32.totalorder %s1653_s23, %s1653_s23 }
   0xc   :  { %1877 = vmatprep.subr.bf16.mxu0 %v2081_v8  ;;  %v2406_v13 = vsel %vm51_vm11, 0.0, %v2084_v18  ;;  %p2034_p0 = scmp.ne.s32.totalorder %s1653_s23, %s2033_s24  ;;  %p2039_p2 = scmp.lt.s32.totalorder %s2033_s24, %s2033_s24 }
   0xd   :  { %1751 = vmatmul.mubr.f32.vlgmr.msra.gmra.mrb[2].mxu1 %v2083_v10 }
   0xe   :  { %1873 = vmatpush3.bf16.msra.mxu1 %v2183_v6  ;;  %1772 = vmatprep.mubr.msk.f32.mxu1 %vm2082_vm2, %v2083_v10  ;;  %p2040_p3 = por %p2039_p2, %p2038_p1 }
   0xf   :  { %1874 = vmatprep.subr.bf16.mxu1 %v2081_v8 }
  0x10   :  { %p2041_p4 = pnand %p2040_p3, %p2034_p0 }
  0x12   :  { %1876 = vmatpush3.bf16.msra.mxu1 %v2191_v9 }
  0x13   :  { %1883 = vmatprep.subr.bf16.mxu1 %v2081_v8 }
  0xd8   :  { %v1741_v14 = vpop.f32.mrb[0].mxu1 }
  0xd9   :  { %v2217_v15 = vadd.f32 %v1741_v14, %v1664_v12  ;;  %v141_v16 = vpop.f32.mrb[1].mxu1 }
  0xda   :  { %v2221_v17 = vadd.f32 %v1664_v12, %v141_v16 }
  0xe0   :  { %v224_v20 = vpop.f32.mrb[2].mxu1 }
  0xe1   :  { %v228_v21 = vadd.f32 %v224_v20, %v2221_v17  ;;  %v1752_v22 = vpop.f32.mrb[3].mxu1 }
  0xe3   :  { %v229_v23 = vmul.f32 %v228_v21, %v2224_v19 }
  0xe5   :  { %1967 = vtanh.f32 %v229_v23 }
  0xef   :  { %v1968_v24 = vpop.eup %1967 }
  0xf0   :  { %v231_v26 = vmul.f32 %v1968_v24, %v2224_v19 }
  0xf2   :  { %v232_v27 = vadd.f32 %v231_v26, %v2229_v25 }
  0xf4   :  { %235 = vrot.lane.b32.xlu0 %v232_v27, %s2085_s3  ;;  %v233_v30 = vmul.f32 0.0, %v232_v27 }
 0x166   :  { %v236_v28 = vpop.permute.xlu0 %235 }
 0x167   :  { %v238_v29 = vmul.f32 %v236_v28, %v232_v27 }
 0x169   :  { %240 = vrot.lane.b32.xlu0 %v238_v29, %s2086_s16 }
 0x1db   :  { %v241_v31 = vpop.permute.xlu0 %240 }
 0x1dc   :  { %v243_v32 = vadd.f32 %v241_v31, %v233_v30 }
 0x1de   :  { %1969 = vtanh.f32 %v243_v32  ;;  %v334_v47 = vrot.slane %v243_v32, 6 }
 0x1e8   :  { %v1970_v33 = vpop.eup %1969 }
 0x1e9   :  { %246 = vrot.lane.b32.xlu1 %v1970_v33, %s2085_s3 }
 0x25b   :  { %v247_v34 = vpop.permute.xlu1 %246 }
 0x25c   :  { %v249_v35 = vmul.f32 %v247_v34, %v232_v27 }
 0x25e   :  { %251 = vrot.lane.b32.xlu1 %v249_v35, %s2086_s16 }
 0x2d0   :  { %v252_v36 = vpop.permute.xlu1 %251 }
 0x2d1   :  { %1762 = vmatmul.mubr.msk.f32.vlgmr.msra.gmra.mrb[0].mxu0 %vm154_vm6, %v252_v36 }
 0x2d2   :  { %1879 = vmatpush3.bf16.msra.mxu0 %v2183_v6  ;;  %1783 = vmatprep.mubr.msk.f32.mxu0 %vm2082_vm2, %v2083_v10 }
 0x2d3   :  { %1880 = vmatprep.subr.bf16.mxu0 %v2081_v8 }
 0x2d6   :  { %1882 = vmatpush3.bf16.msra.mxu0 %v2191_v9 }
 0x2d7   :  { %1889 = vmatprep.subr.bf16.mxu0 %v2081_v8 }
 0x3a4   :  { %v321_v37 = vpop.f32.mrb[0].mxu0 }
 0x3a5   :  { %v326_v38 = vrot.slane %v321_v37, 6  ;;  %v1763_v39 = vpop.f32.mrb[1].mxu0 }
 0x3a7   :  { %v328_v40 = vadd.f32 %v326_v38, %v2221_v17 }
 0x3a9   :  { %v329_v41 = vmul.f32 %v328_v40, %v2224_v19 }
 0x3ab   :  { %1971 = vtanh.f32 %v329_v41 }
 0x3b5   :  { %v1972_v42 = vpop.eup %1971 }
 0x3b6   :  { %v331_v43 = vmul.f32 %v1972_v42, %v2224_v19 }
 0x3b8   :  { %v332_v44 = vadd.f32 %v331_v43, %v2229_v25 }
 0x3ba   :  { %338 = vrot.lane.b32.xlu0 %v332_v44, %s2085_s3  ;;  %v336_v48 = vmul.f32 %v334_v47, %v332_v44 }
 0x42c   :  { %v339_v45 = vpop.permute.xlu0 %338 }
 0x42d   :  { %v341_v46 = vmul.f32 %v339_v45, %v332_v44 }
 0x42f   :  { %343 = vrot.lane.b32.xlu1 %v341_v46, %s2086_s16 }
 0x4a1   :  { %v344_v49 = vpop.permute.xlu1 %343 }
 0x4a2   :  { %v346_v50 = vadd.f32 %v344_v49, %v336_v48 }
 0x4a4   :  { %1973 = vtanh.f32 %v346_v50  ;;  %v438_v2 = vrot.slane %v346_v50, 6 }
 0x4ae   :  { %v1974_v51 = vpop.eup %1973 }
 0x4af   :  { %349 = vrot.lane.b32.xlu0 %v1974_v51, %s2085_s3 }
 0x521   :  { %v350_v52 = vpop.permute.xlu0 %349 }
 0x522   :  { %v352_v53 = vmul.f32 %v350_v52, %v332_v44 }
 0x524   :  { %v354_v54 = vrot.slane %v352_v53, 2 }
 0x526   :  { %355 = vrot.lane.b32.xlu1 %v354_v54, %s2086_s16 }
 0x598   :  { %v356_v55 = vpop.permute.xlu1 %355 }
 0x599   :  { %1773 = vmatmul.mubr.msk.f32.vlgmr.msra.gmra.mrb[4].mxu1 %vm154_vm6, %v356_v55 }
 0x59a   :  { %1885 = vmatpush3.bf16.msra.mxu1 %v2183_v6  ;;  %1794 = vmatprep.mubr.msk.f32.mxu1 %vm2082_vm2, %v2083_v10 }
 0x59b   :  { %1886 = vmatprep.subr.bf16.mxu1 %v2081_v8 }
 0x59e   :  { %1888 = vmatpush3.bf16.msra.mxu1 %v2191_v9 }
 0x59f   :  { %1895 = vmatprep.subr.bf16.mxu1 %v2081_v8 }
 0x66c   :  { %v425_v56 = vpop.f32.mrb[4].mxu1 }
 0x66d   :  { %v430_v57 = vrot.slane %v425_v56, 4  ;;  %v1774_v58 = vpop.f32.mrb[5].mxu1 }
 0x66f   :  { %v432_v59 = vadd.f32 %v430_v57, %v2221_v17 }
 0x671   :  { %v433_v60 = vmul.f32 %v432_v59, %v2224_v19 }
 0x673   :  { %1975 = vtanh.f32 %v433_v60 }
 0x67d   :  { %v1976_v61 = vpop.eup %1975 }
 0x67e   :  { %v435_v62 = vmul.f32 %v1976_v61, %v2224_v19 }
 0x680   :  { %v436_v63 = vadd.f32 %v435_v62, %v2229_v25 }
 0x682   :  { %442 = vrot.lane.b32.xlu0 %v436_v63, %s2085_s3  ;;  %v440_v3 = vmul.f32 %v438_v2, %v436_v63 }
 0x6f4   :  { %v443_v0 = vpop.permute.xlu0 %442 }
 0x6f5   :  { %v445_v1 = vmul.f32 %v443_v0, %v436_v63 }
 0x6f7   :  { %447 = vrot.lane.b32.xlu1 %v445_v1, %s2086_s16 }
 0x769   :  { %v448_v4 = vpop.permute.xlu1 %447 }
 0x76a   :  { %v450_v5 = vadd.f32 %v448_v4, %v440_v3 }
 0x76c   :  { %1977 = vtanh.f32 %v450_v5  ;;  %v542_v32 = vrot.slane %v450_v5, 6 }
 0x776   :  { %v1978_v7 = vpop.eup %1977 }
 0x777   :  { %453 = vrot.lane.b32.xlu0 %v1978_v7, %s2085_s3 }
 0x7e9   :  { %v454_v12 = vpop.permute.xlu0 %453 }
 0x7ea   :  { %v456_v14 = vmul.f32 %v454_v12, %v436_v63 }
 0x7ec   :  { %v458_v16 = vrot.slane %v456_v14, 4 }
 0x7ee   :  { %459 = vrot.lane.b32.xlu1 %v458_v16, %s2086_s16 }
 0x860   :  { %v460_v20 = vpop.permute.xlu1 %459 }
 0x861   :  { %1784 = vmatmul.mubr.msk.f32.vlgmr.msra.gmra.mrb[2].mxu0 %vm154_vm6, %v460_v20 }
 0x862   :  { %1891 = vmatpush3.bf16.msra.mxu0 %v2183_v6  ;;  %1805 = vmatprep.mubr.msk.f32.mxu0 %vm2082_vm2, %v2083_v10 }
 0x863   :  { %1892 = vmatprep.subr.bf16.mxu0 %v2081_v8 }
 0x866   :  { %1894 = vmatpush3.bf16.msra.mxu0 %v2191_v9 }
 0x867   :  { %1901 = vmatprep.subr.bf16.mxu0 %v2081_v8 }
 0x934   :  { %v529_v21 = vpop.f32.mrb[2].mxu0 }
 0x935   :  { %v534_v22 = vrot.slane %v529_v21, 2  ;;  %v1785_v23 = vpop.f32.mrb[3].mxu0 }
 0x937   :  { %v536_v24 = vadd.f32 %v534_v22, %v2221_v17 }
 0x939   :  { %v537_v26 = vmul.f32 %v536_v24, %v2224_v19 }
 0x93b   :  { %1979 = vtanh.f32 %v537_v26 }
 0x945   :  { %v1980_v27 = vpop.eup %1979 }
 0x946   :  { %v539_v28 = vmul.f32 %v1980_v27, %v2224_v19 }
 0x948   :  { %v540_v29 = vadd.f32 %v539_v28, %v2229_v25 }
 0x94a   :  { %546 = vrot.lane.b32.xlu0 %v540_v29, %s2085_s3  ;;  %v544_v33 = vmul.f32 %v542_v32, %v540_v29 }
 0x9bc   :  { %v547_v30 = vpop.permute.xlu0 %546 }
 0x9bd   :  { %v549_v31 = vmul.f32 %v547_v30, %v540_v29 }
 0x9bf   :  { %551 = vrot.lane.b32.xlu1 %v549_v31, %s2086_s16 }
 0xa31   :  { %v552_v34 = vpop.permute.xlu1 %551 }
 0xa32   :  { %v554_v35 = vadd.f32 %v552_v34, %v544_v33 }
 0xa34   :  { %1981 = vtanh.f32 %v554_v35  ;;  %v643_v49 = vrot.slane %v554_v35, 6 }
 0xa3e   :  { %v1982_v17 = vpop.eup %1981 }
 0xa3f   :  { %557 = vrot.lane.b32.xlu0 %v1982_v17, %s2085_s3 }
 0xab1   :  { %v558_v36 = vpop.permute.xlu0 %557 }
 0xab2   :  { %v560_v37 = vmul.f32 %v558_v36, %v540_v29 }
 0xab4   :  { %v562_v38 = vrot.slane %v560_v37, 6 }
 0xab6   :  { %563 = vrot.lane.b32.xlu1 %v562_v38, %s2086_s16 }
 0xb28   :  { %v564_v39 = vpop.permute.xlu1 %563 }
 0xb29   :  { %1795 = vmatmul.mubr.msk.f32.vlgmr.msra.gmra.mrb[6].mxu1 %vm154_vm6, %v564_v39 }
 0xb2a   :  { %1897 = vmatpush3.bf16.msra.mxu1 %v2183_v6  ;;  %1816 = vmatprep.mubr.msk.f32.mxu1 %vm2082_vm2, %v2083_v10 }
 0xb2b   :  { %1898 = vmatprep.subr.bf16.mxu1 %v2081_v8 }
 0xb2e   :  { %1900 = vmatpush3.bf16.msra.mxu1 %v2191_v9 }
 0xb2f   :  { %1907 = vmatprep.subr.bf16.mxu1 %v2081_v8 }
 0xbfc   :  { %v633_v40 = vpop.f32.mrb[6].mxu1 }
 0xbfd   :  { %v637_v41 = vadd.f32 %v633_v40, %v2217_v15  ;;  %v1796_v42 = vpop.f32.mrb[7].mxu1 }
 0xbff   :  { %v638_v43 = vmul.f32 %v637_v41, %v2224_v19 }
 0xc01   :  { %1983 = vtanh.f32 %v638_v43 }
 0xc0b   :  { %v1984_v44 = vpop.eup %1983 }
 0xc0c   :  { %v640_v45 = vmul.f32 %v1984_v44, %v2224_v19 }
 0xc0e   :  { %v641_v46 = vadd.f32 %v640_v45, %v2229_v25 }
 0xc10   :  { %647 = vrot.lane.b32.xlu0 %v641_v46, %s2085_s3  ;;  %v645_v50 = vmul.f32 %v643_v49, %v641_v46 }
 0xc82   :  { %v648_v47 = vpop.permute.xlu0 %647 }
 0xc83   :  { %v650_v48 = vmul.f32 %v648_v47, %v641_v46 }
 0xc85   :  { %652 = vrot.lane.b32.xlu1 %v650_v48, %s2086_s16 }
 0xcf7   :  { %v653_v51 = vpop.permute.xlu1 %652 }
 0xcf8   :  { %v655_v52 = vadd.f32 %v653_v51, %v645_v50 }
 0xcfa   :  { %1985 = vtanh.f32 %v655_v52 }
 0xd04   :  { %v1986_v53 = vpop.eup %1985 }
 0xd05   :  { %658 = vrot.lane.b32.xlu0 %v1986_v53, %s2085_s3 }
 0xd77   :  { %v659_v54 = vpop.permute.xlu0 %658 }
 0xd78   :  { %v661_v55 = vmul.f32 %v659_v54, %v641_v46  ;;  %v976_v54 = vld [vmem:[%s2589_s4 + $0x18] sm:$0xff] }
 0xd7a   :  { %663 = vrot.lane.b32.xlu1 %v661_v55, %s2086_s16 }
 0xdec   :  { %v664_v56 = vpop.permute.xlu1 %663 }
 0xded   :  { %1806 = vmatmul.mubr.msk.f32.vlgmr.msra.gmra.mrb[4].mxu0 %vm154_vm6, %v664_v56 }
 0xdee   :  { %1903 = vmatpush3.bf16.msra.mxu0 %v2183_v6  ;;  %1827 = vmatprep.mubr.msk.f32.mxu0 %vm2082_vm2, %v2083_v10 }
 0xdef   :  { %1904 = vmatprep.subr.bf16.mxu0 %v2081_v8 }
 0xdf2   :  { %1906 = vmatpush3.bf16.msra.mxu0 %v2191_v9  ;;  %v746_v9 = vrot.slane %v655_v52, 6 }
 0xdf3   :  { %1913 = vmatprep.subr.bf16.mxu0 %v2081_v8 }
 0xec0   :  { %v733_v57 = vpop.f32.mrb[4].mxu0 }
 0xec1   :  { %v738_v58 = vrot.slane %v733_v57, 6  ;;  %v1807_v59 = vpop.f32.mrb[5].mxu0 }
 0xec3   :  { %v740_v60 = vadd.f32 %v738_v58, %v2217_v15 }
 0xec5   :  { %v741_v61 = vmul.f32 %v740_v60, %v2224_v19 }
 0xec7   :  { %1987 = vtanh.f32 %v741_v61  ;;  %v1063_v61 = vld [vmem:[%s2591_s6] sm:$0xff] }
 0xed1   :  { %v1988_v62 = vpop.eup %1987 }
 0xed2   :  { %v743_v6 = vmul.f32 %v1988_v62, %v2224_v19  ;;  %v1064_v62 = vld [vmem:[%s2591_s6 + $0x8] sm:$0xff] }
 0xed4   :  { %v744_v63 = vadd.f32 %v743_v6, %v2229_v25  ;;  %v1914_v6 = vpack.c.bf16 %v1064_v62, %v1063_v61 }
 0xed6   :  { %750 = vrot.lane.b32.xlu0 %v744_v63, %s2085_s3  ;;  %v748_v2 = vmul.f32 %v746_v9, %v744_v63 }
 0xf48   :  { %v751_v0 = vpop.permute.xlu0 %750 }
 0xf49   :  { %v753_v1 = vmul.f32 %v751_v0, %v744_v63 }
 0xf4b   :  { %755 = vrot.lane.b32.xlu1 %v753_v1, %s2086_s16 }
 0xfbd   :  { %v756_v3 = vpop.permute.xlu1 %755 }
 0xfbe   :  { %v758_v4 = vadd.f32 %v756_v3, %v748_v2  ;;  %v1146_v2 = vld [vmem:[%s2593_s8] sm:$0xff]  ;;  %v1147_v3 = vld [vmem:[%s2593_s8 + $0x8] sm:$0xff] }
 0xfc0   :  { %1989 = vtanh.f32 %v758_v4  ;;  %v850_v31 = vrot.slane %v758_v4, 6  ;;  %v1917_v4 = vpack.c.bf16 %v1147_v3, %v1146_v2 }
 0xfca   :  { %v1990_v5 = vpop.eup %1989 }
 0xfcb   :  { %761 = vrot.lane.b32.xlu0 %v1990_v5, %s2085_s3 }
0x103d   :  { %v762_v7 = vpop.permute.xlu0 %761 }
0x103e   :  { %v764_v12 = vmul.f32 %v762_v7, %v744_v63  ;;  %v1675_v63 = vld [vmem:[%s2590_s5] ss:$0 sm:$0xff]  ;;  %v1148_v7 = vld [vmem:[%s2593_s8 + $0x10] sm:$0xff] }
0x1040   :  { %v766_v14 = vrot.slane %v764_v12, 2  ;;  %v1149_v12 = vld [vmem:[%s2593_s8 + $0x18] sm:$0xff] }
0x1042   :  { %767 = vrot.lane.b32.xlu1 %v766_v14, %s2086_s16  ;;  %v1920_v14 = vpack.c.bf16 %v1149_v12, %v1148_v7 }
0x10b4   :  { %v768_v16 = vpop.permute.xlu1 %767 }
0x10b5   :  { %1817 = vmatmul.mubr.msk.f32.vlgmr.msra.gmra.mrb[8].mxu1 %vm154_vm6, %v768_v16  ;;  %v1677_v16 = vld [vmem:[%s2592_s7] ss:$0 sm:$0xff] }
0x10b6   :  { %1838 = vmatprep.mubr.msk.f32.mxu1 %vm2082_vm2, %v2083_v10 }
0x1188   :  { %v837_v20 = vpop.f32.mrb[8].mxu1 }
0x1189   :  { %v842_v21 = vrot.slane %v837_v20, 4  ;;  %v1818_v22 = vpop.f32.mrb[9].mxu1 }
0x118b   :  { %v844_v23 = vadd.f32 %v842_v21, %v2217_v15 }
0x118d   :  { %v845_v24 = vmul.f32 %v844_v23, %v2224_v19 }
0x118f   :  { %1991 = vtanh.f32 %v845_v24  ;;  %v1230_v24 = vld [vmem:[%s2594_s9] sm:$0xf]  ;;  %s2087_s9 = smov 120  }
0x1199   :  { %v1992_v26 = vpop.eup %1991 }
0x119a   :  { %v847_v27 = vmul.f32 %v1992_v26, %v2224_v19 }
0x119c   :  { %v848_v28 = vadd.f32 %v847_v27, %v2229_v25 }
0x119e   :  { %854 = vrot.lane.b32.xlu0 %v848_v28, %s2085_s3  ;;  %v852_v32 = vmul.f32 %v850_v31, %v848_v28 }
0x1210   :  { %v855_v29 = vpop.permute.xlu0 %854 }
0x1211   :  { %v857_v30 = vmul.f32 %v855_v29, %v848_v28 }
0x1213   :  { %859 = vrot.lane.b32.xlu1 %v857_v30, %s2086_s16 }
0x1285   :  { %v860_v33 = vpop.permute.xlu1 %859 }
0x1286   :  { %v862_v34 = vadd.f32 %v860_v33, %v852_v32 }
0x1288   :  { %1993 = vtanh.f32 %v862_v34  ;;  %v954_v49 = vrot.slane %v862_v34, 6 }
0x1292   :  { %v1994_v35 = vpop.eup %1993 }
0x1293   :  { %865 = vrot.lane.b32.xlu0 %v1994_v35, %s2085_s3 }
0x1305   :  { %v866_v17 = vpop.permute.xlu0 %865 }
0x1306   :  { %v868_v36 = vmul.f32 %v866_v17, %v848_v28 }
0x1308   :  { %v870_v37 = vrot.slane %v868_v36, 4  ;;  %v1679_v36 = vld [vmem:[%s2595_s10] ss:$0 sm:$0xff]  ;;  %s2088_s10 = smov 4  }
0x130a   :  { %871 = vrot.lane.b32.xlu1 %v870_v37, %s2086_s16 }
0x137c   :  { %v872_v38 = vpop.permute.xlu1 %871 }
0x137d   :  { %1828 = vmatmul.mubr.msk.f32.vlgmr.msra.gmra.mrb[6].mxu0 %vm154_vm6, %v872_v38 }
0x137e   :  { %1845 = vmatprep.mubr.msk.f32.mxu0 %vm2082_vm2, %v2083_v10  ;;  %1915 = vmatpush3.bf16.msra.mxu0 %v1914_v6 }
0x137f   :  { %1916 = vmatprep.subr.bf16.mxu0 %v2081_v8 }
0x1450   :  { %v941_v39 = vpop.f32.mrb[6].mxu0 }
0x1451   :  { %v946_v40 = vrot.slane %v941_v39, 2  ;;  %v1829_v41 = vpop.f32.mrb[7].mxu0 }
0x1452   :  { %v2401_v41 = vsel %vm51_vm11, 1.0, %v2084_v18  ;;  %v2090_v18 = vmov 12  }
0x1453   :  { %v948_v42 = vadd.f32 %v946_v40, %v2217_v15  ;;  %v973_v15 = vld [vmem:[%s2589_s4] sm:$0xff]  ;;  %1941 = vset.pattern.permute.xlu1 %v2090_v18 }
0x1455   :  { %v949_v43 = vmul.f32 %v948_v42, %v2224_v19 }
0x1457   :  { %1995 = vtanh.f32 %v949_v43 }
0x1461   :  { %v1996_v44 = vpop.eup %1995 }
0x1462   :  { %v951_v45 = vmul.f32 %v1996_v44, %v2224_v19  ;;  %v974_v19 = vld [vmem:[%s2589_s4 + $0x8] sm:$0xff] }
0x1463   :  { %v1908_v53 = vpack.c.bf16 %v974_v19, %v973_v15 }
0x1464   :  { %v952_v46 = vadd.f32 %v951_v45, %v2229_v25  ;;  %v975_v25 = vld [vmem:[%s2589_s4 + $0x10] sm:$0xff] }
0x1465   :  { %1909 = vmatpush3.bf16.msra.mxu1 %v1908_v53  ;;  %v1911_v55 = vpack.c.bf16 %v976_v54, %v975_v25  ;;  %v2092_v53 = vmov 14   ;;  %v2093_v54 = vmov 15  }
0x1466   :  { %958 = vrot.lane.b32.xlu0 %v952_v46, %s2085_s3  ;;  %v956_v50 = vmul.f32 %v954_v49, %v952_v46  ;;  %1910 = vmatprep.subr.bf16.mxu1 %v2081_v8 }
0x1469   :  { %1912 = vmatpush3.bf16.msra.mxu1 %v1911_v55 }
0x14d8   :  { %v959_v47 = vpop.permute.xlu0 %958 }
0x14d9   :  { %v961_v48 = vmul.f32 %v959_v47, %v952_v46 }
0x14db   :  { %963 = vrot.lane.b32.xlu1 %v961_v48, %s2086_s16 }
0x154d   :  { %v964_v51 = vpop.permute.xlu1 %963 }
0x154e   :  { %v966_v52 = vadd.f32 %v964_v51, %v956_v50 }
0x1550   :  { %1997 = vtanh.f32 %v966_v52  ;;  %v2089_v52 = vmov 13  }
0x1551   :  { %1942 = vset.pattern.permute.xlu0 %v2089_v52 }
0x155a   :  { %v1998_v56 = vpop.eup %1997 }
0x155b   :  { %969 = vrot.lane.b32.xlu0 %v1998_v56, %s2085_s3 }
0x15cd   :  { %v970_v57 = vpop.permute.xlu0 %969 }
0x15ce   :  { %v972_v58 = vmul.f32 %v970_v57, %v952_v46 }
0x15d0   :  { %v985_v59 = vrot.slane %v972_v58, 6 }
0x15d2   :  { %986 = vrot.lane.b32.xlu1 %v985_v59, %s2086_s16 }
0x1644   :  { %v987_v60 = vpop.permute.xlu1 %986 }
0x1645   :  { %1839 = vmatmul.mubr.msk.f32.vlgmr.msra.gmra.mrb[10].mxu1 %vm154_vm6, %v987_v60 }
0x1718   :  { %v1056_v0 = vpop.f32.mrb[10].mxu1 }
0x1719   :  { %v1057_v1 = vadd.f32 %v1675_v63, %v1056_v0  ;;  %v1840_v9 = vpop.f32.mrb[11].mxu1 }
0x171b   :  { %1999 = vtanh.f32 %v1057_v1 }
0x1725   :  { %v2000_v5 = vpop.eup %1999 }
0x1726   :  { %1846 = vmatmul.mubr.msk.f32.vlgmr.msra.gmra.mrb[8].mxu0 %vm1072_vm7, %v2000_v5  ;;  %1062 = vst.msk [vmem:[#allocation4] sm:$0x3] %vm1061_vm8, %v2000_v5 }
0x1727   :  { %1918 = vmatpush3.bf16.msra.mxu0 %v1917_v4  ;;  %1856 = vmatprep.mubr.msk.f32.mxu0 %vm2082_vm2, %v2083_v10 }
0x1728   :  { %1919 = vmatprep.subr.bf16.mxu0 %v2081_v8  ;;  %v1232_v8 = vshrl.u32 %v42_v11, 7 }
0x172a   :  { %v1233_v10 = vsub.s32 0, %v1232_v8  ;;  %v1238_v23 = vsub.s32 1, %v1232_v8  ;;  %v1244_v28 = vsub.s32 2, %v1232_v8  ;;  %v1250_v32 = vsub.s32 3, %v1232_v8 }
0x172b   :  { %1921 = vmatpush3.bf16.msra.mxu0 %v1920_v14 }
0x172c   :  { %v2381_v26 = vrot.slane %v1230_v24, %v1233_v10  ;;  %v2383_v27 = vrot.slane %v1230_v24, %v1238_v23  ;;  %v2387_v31 = vrot.slane %v1230_v24, %v1244_v28  ;;  %v2390_v34 = vrot.slane %v1230_v24, %v1250_v32 }
0x172e   :  { %v1235_v29 = vmul.f32 0.0, %v2381_v26  ;;  %v1240_v30 = vmul.f32 0.0, %v2383_v27  ;;  %v1246_v11 = vmul.f32 0.0, %v2387_v31  ;;  %v1252_v17 = vmul.f32 0.0, %v2390_v34 }
0x1730   :  { %v1241_v33 = vadd.f32 %v1240_v30, %v1235_v29 }
0x1732   :  { %v1247_v35 = vadd.f32 %v1246_v11, %v1241_v33 }
0x1734   :  { %v1253_v37 = vadd.f32 %v1252_v17, %v1247_v35 }
0x17f9   :  { %v1142_v20 = vpop.f32.mrb[8].mxu0 }
0x17fa   :  { %v1143_v21 = vadd.f32 %v1677_v16, %v1142_v20  ;;  %v1847_v22 = vpop.f32.mrb[9].mxu0 }
0x17fc   :  { %1857 = vmatmul.mubr.msk.f32.vlgmr.msra.gmra.mrb[10].mxu0 %vm154_vm6, %v1143_v21 }
0x18cf   :  { %v1226_v38 = vpop.f32.mrb[10].mxu0 }
0x18d0   :  { %v2398_v39 = vadd.f32 %v1679_v36, %v1226_v38  ;;  %v1858_v40 = vpop.f32.mrb[11].mxu0 }
0x18d2   :  { %v1254_v42 = vadd.f32 %v1253_v37, %v2398_v39 }
0x18d4   :  { %v1255_v43 = vmul.f32 %v1254_v42, %v2401_v41 }
0x18d6   :  { %2001 = vtanh.f32 %v1255_v43 }
0x18e0   :  { %v2002_v44 = vpop.eup %2001 }
0x18e1   :  { %v1257_v45 = vmul.f32 %v2002_v44, %v2401_v41 }
0x18e3   :  { %v1258_v46 = vadd.f32 %v1257_v45, %v2406_v13 }
0x18e5   :  { %1261 = vrot.lane.b32.xlu0 %v1258_v46, %s2087_s9  ;;  %v1259_v49 = vmul.f32 0.0, %v1258_v46 }
0x1957   :  { %v1262_v47 = vpop.permute.xlu0 %1261 }
0x1958   :  { %v1264_v48 = vmul.f32 %v1262_v47, %v1258_v46 }
0x195a   :  { %1266 = vrot.lane.b32.xlu1 %v1264_v48, %s2088_s10 }
0x19cc   :  { %v1267_v50 = vpop.permute.xlu1 %1266 }
0x19cd   :  { %v1269_v51 = vadd.f32 %v1267_v50, %v1259_v49 }
0x19cf   :  { %2003 = vtanh.f32 %v1269_v51 }
0x19d9   :  { %v2004_v15 = vpop.eup %2003 }
0x19da   :  { %1272 = vrot.lane.b32.xlu0 %v2004_v15, %s2091_s18 }
0x1a4c   :  { %v1273_v19 = vpop.permute.xlu0 %1272 }
0x1a4d   :  { %v2415_v25 = vmul.f32 %v1273_v19, %v1258_v46 }
0x1a4f   :  { %1288 = vperm.xlu0 %1942, %v2415_v25   ;;  %1283 = vperm.xlu1 %1941, %v2415_v25  }
0x1a53   :  { %1943 = vset.pattern.permute.xlu1 %v2092_v53 }
0x1a54   :  { %1294 = vperm.xlu1 %1943, %v2415_v25  }
0x1a58   :  { %1944 = vset.pattern.permute.xlu1 %v2093_v54 }
0x1a59   :  { %1300 = vperm.xlu1 %1944, %v2415_v25  }
0x1a5d   :  { %1945 = vset.pattern.permute.xlu1 %v2090_v18 }
0x1ace   :  { %v1284_v55 = vpop.permute.xlu1 %1283  ;;  %v1289_v56 = vpop.permute.xlu0 %1288 }
0x1acf   :  { %v1291_v57 = vmul.f32 %v1289_v56, %v2383_v27  ;;  %v1286_v58 = vmul.f32 %v1284_v55, %v2381_v26 }
0x1ad1   :  { %v1292_v61 = vadd.f32 %v1291_v57, %v1286_v58 }
0x1ad3   :  { %v1295_v59 = vpop.permute.xlu1 %1294 }
0x1ad4   :  { %v1297_v60 = vmul.f32 %v1295_v59, %v2387_v31 }
0x1ad6   :  { %v1298_v6 = vadd.f32 %v1297_v60, %v1292_v61 }
0x1ad8   :  { %v1301_v62 = vpop.permute.xlu1 %1300 }
0x1ad9   :  { %v1303_v63 = vmul.f32 %v1301_v62, %v2390_v34 }
0x1adb   :  { %v1304_v0 = vadd.f32 %v1303_v63, %v1298_v6 }
0x1add   :  { %v1305_v1 = vadd.f32 %v1304_v0, %v2398_v39 }
0x1adf   :  { %v1306_v9 = vmul.f32 %v1305_v1, %v2401_v41 }
0x1ae1   :  { %2005 = vtanh.f32 %v1306_v9 }
0x1aeb   :  { %v2006_v2 = vpop.eup %2005 }
0x1aec   :  { %v1308_v3 = vmul.f32 %v2006_v2, %v2401_v41 }
0x1aee   :  { %v1309_v4 = vadd.f32 %v1308_v3, %v2406_v13 }
0x1af0   :  { %1312 = vrot.lane.b32.xlu0 %v1309_v4, %s2087_s9  ;;  %v1310_v12 = vmul.f32 %v1309_v4, %v1269_v51 }
0x1b62   :  { %v1313_v5 = vpop.permute.xlu0 %1312 }
0x1b63   :  { %v1315_v7 = vmul.f32 %v1313_v5, %v1309_v4 }
0x1b65   :  { %1317 = vrot.lane.b32.xlu1 %v1315_v7, %s2088_s10 }
0x1bd7   :  { %v1318_v14 = vpop.permute.xlu1 %1317 }
0x1bd8   :  { %v1320_v16 = vadd.f32 %v1318_v14, %v1310_v12 }
0x1bda   :  { %2007 = vtanh.f32 %v1320_v16 }
0x1be4   :  { %v2008_v20 = vpop.eup %2007 }
0x1be5   :  { %1323 = vrot.lane.b32.xlu0 %v2008_v20, %s2091_s18 }
0x1c57   :  { %v1324_v21 = vpop.permute.xlu0 %1323 }
0x1c58   :  { %v2435_v22 = vmul.f32 %v1324_v21, %v1309_v4 }
0x1c5a   :  { %1339 = vperm.xlu0 %1942, %v2435_v22   ;;  %1334 = vperm.xlu1 %1945, %v2435_v22  }
0x1c5e   :  { %1947 = vset.pattern.permute.xlu0 %v2093_v54  ;;  %1946 = vset.pattern.permute.xlu1 %v2092_v53 }
0x1c5f   :  { %1351 = vperm.xlu0 %1947, %v2435_v22   ;;  %1345 = vperm.xlu1 %1946, %v2435_v22  }
0x1c63   :  { %1949 = vset.pattern.permute.xlu0 %v2089_v52  ;;  %1948 = vset.pattern.permute.xlu1 %v2090_v18 }
0x1cd9   :  { %v1340_v8 = vpop.permute.xlu0 %1339  ;;  %v1335_v10 = vpop.permute.xlu1 %1334 }
0x1cda   :  { %v1342_v23 = vmul.f32 %v1340_v8, %v2383_v27  ;;  %v1337_v24 = vmul.f32 %v1335_v10, %v2381_v26 }
0x1cdc   :  { %v1343_v30 = vadd.f32 %v1342_v23, %v1337_v24 }
0x1cde   :  { %v1352_v28 = vpop.permute.xlu0 %1351  ;;  %v1346_v29 = vpop.permute.xlu1 %1345 }
0x1cdf   :  { %v1348_v32 = vmul.f32 %v1346_v29, %v2387_v31  ;;  %v1354_v33 = vmul.f32 %v1352_v28, %v2390_v34 }
0x1ce1   :  { %v1349_v11 = vadd.f32 %v1348_v32, %v1343_v30 }
0x1ce3   :  { %v1355_v35 = vadd.f32 %v1354_v33, %v1349_v11 }
0x1ce5   :  { %v1356_v17 = vadd.f32 %v1355_v35, %v2398_v39 }
0x1ce7   :  { %v1357_v36 = vmul.f32 %v1356_v17, %v2401_v41 }
0x1ce9   :  { %2009 = vtanh.f32 %v1357_v36 }
0x1cf3   :  { %v2010_v37 = vpop.eup %2009 }
0x1cf4   :  { %v1359_v38 = vmul.f32 %v2010_v37, %v2401_v41 }
0x1cf6   :  { %v1360_v40 = vadd.f32 %v1359_v38, %v2406_v13 }
0x1cf8   :  { %1363 = vrot.lane.b32.xlu1 %v1360_v40, %s2087_s9  ;;  %v1361_v44 = vmul.f32 %v1360_v40, %v1320_v16 }
0x1d6a   :  { %v1364_v42 = vpop.permute.xlu1 %1363 }
0x1d6b   :  { %v1366_v43 = vmul.f32 %v1364_v42, %v1360_v40 }
0x1d6d   :  { %1368 = vrot.lane.b32.xlu1 %v1366_v43, %s2088_s10 }
0x1ddf   :  { %v1369_v45 = vpop.permute.xlu1 %1368 }
0x1de0   :  { %v1371_v46 = vadd.f32 %v1369_v45, %v1361_v44 }
0x1de2   :  { %2011 = vtanh.f32 %v1371_v46 }
0x1dec   :  { %v2012_v47 = vpop.eup %2011 }
0x1ded   :  { %1374 = vrot.lane.b32.xlu0 %v2012_v47, %s2091_s18 }
0x1e5f   :  { %v1375_v48 = vpop.permute.xlu0 %1374 }
0x1e60   :  { %v2456_v49 = vmul.f32 %v1375_v48, %v1360_v40 }
0x1e62   :  { %1390 = vperm.xlu0 %1949, %v2456_v49   ;;  %1385 = vperm.xlu1 %1948, %v2456_v49  }
0x1e66   :  { %1950 = vset.pattern.permute.xlu1 %v2092_v53 }
0x1e67   :  { %1396 = vperm.xlu1 %1950, %v2456_v49  }
0x1e6b   :  { %1951 = vset.pattern.permute.xlu1 %v2093_v54 }
0x1e6c   :  { %1402 = vperm.xlu1 %1951, %v2456_v49  }
0x1e70   :  { %1952 = vset.pattern.permute.xlu1 %v2090_v18 }
0x1ee1   :  { %v1386_v50 = vpop.permute.xlu1 %1385  ;;  %v1391_v51 = vpop.permute.xlu0 %1390 }
0x1ee2   :  { %v1393_v15 = vmul.f32 %v1391_v51, %v2383_v27  ;;  %v1388_v19 = vmul.f32 %v1386_v50, %v2381_v26 }
0x1ee4   :  { %v1394_v57 = vadd.f32 %v1393_v15, %v1388_v19 }
0x1ee6   :  { %v1397_v55 = vpop.permute.xlu1 %1396 }
0x1ee7   :  { %v1399_v56 = vmul.f32 %v1397_v55, %v2387_v31 }
0x1ee9   :  { %v1400_v59 = vadd.f32 %v1399_v56, %v1394_v57 }
0x1eeb   :  { %v1403_v58 = vpop.permute.xlu1 %1402 }
0x1eec   :  { %v1405_v60 = vmul.f32 %v1403_v58, %v2390_v34 }
0x1eee   :  { %v1406_v61 = vadd.f32 %v1405_v60, %v1400_v59 }
0x1ef0   :  { %v1407_v62 = vadd.f32 %v1406_v61, %v2398_v39 }
0x1ef2   :  { %v1408_v6 = vmul.f32 %v1407_v62, %v2401_v41 }
0x1ef4   :  { %2013 = vtanh.f32 %v1408_v6 }
0x1efe   :  { %v2014_v63 = vpop.eup %2013 }
0x1eff   :  { %v1410_v0 = vmul.f32 %v2014_v63, %v2401_v41 }
0x1f01   :  { %v1411_v1 = vadd.f32 %v1410_v0, %v2406_v13 }
0x1f03   :  { %1414 = vrot.lane.b32.xlu0 %v1411_v1, %s2087_s9  ;;  %v1412_v3 = vmul.f32 %v1411_v1, %v1371_v46 }
0x1f75   :  { %v1415_v9 = vpop.permute.xlu0 %1414 }
0x1f76   :  { %v1417_v2 = vmul.f32 %v1415_v9, %v1411_v1 }
0x1f78   :  { %1419 = vrot.lane.b32.xlu1 %v1417_v2, %s2088_s10 }
0x1fea   :  { %v1420_v4 = vpop.permute.xlu1 %1419 }
0x1feb   :  { %v1422_v5 = vadd.f32 %v1420_v4, %v1412_v3 }
0x1fed   :  { %2015 = vtanh.f32 %v1422_v5 }
0x1ff7   :  { %v2016_v7 = vpop.eup %2015 }
0x1ff8   :  { %1425 = vrot.lane.b32.xlu0 %v2016_v7, %s2091_s18 }
0x206a   :  { %v1426_v12 = vpop.permute.xlu0 %1425 }
0x206b   :  { %v2476_v14 = vmul.f32 %v1426_v12, %v1411_v1 }
0x206d   :  { %1438 = vperm.xlu0 %1949, %v2476_v14   ;;  %1433 = vperm.xlu1 %1952, %v2476_v14  }
0x2071   :  { %1954 = vset.pattern.permute.xlu0 %v2093_v54  ;;  %1953 = vset.pattern.permute.xlu1 %v2092_v53 }
0x2072   :  { %1450 = vperm.xlu0 %1954, %v2476_v14   ;;  %1444 = vperm.xlu1 %1953, %v2476_v14  }
0x2076   :  { %1956 = vset.pattern.permute.xlu0 %v2089_v52  ;;  %1955 = vset.pattern.permute.xlu1 %v2090_v18 }
0x20ec   :  { %v1439_v16 = vpop.permute.xlu0 %1438  ;;  %v1434_v20 = vpop.permute.xlu1 %1433 }
0x20ed   :  { %v1441_v21 = vmul.f32 %v1439_v16, %v2383_v27  ;;  %v1436_v8 = vmul.f32 %v1434_v20, %v2381_v26 }
0x20ef   :  { %v1442_v24 = vadd.f32 %v1441_v21, %v1436_v8 }
0x20f1   :  { %v1451_v10 = vpop.permute.xlu0 %1450  ;;  %v1445_v23 = vpop.permute.xlu1 %1444 }
0x20f2   :  { %v1447_v28 = vmul.f32 %v1445_v23, %v2387_v31  ;;  %v1453_v29 = vmul.f32 %v1451_v10, %v2390_v34 }
0x20f4   :  { %v1448_v30 = vadd.f32 %v1447_v28, %v1442_v24 }
0x20f6   :  { %v1454_v32 = vadd.f32 %v1453_v29, %v1448_v30 }
0x20f8   :  { %v1455_v33 = vadd.f32 %v1454_v32, %v2398_v39 }
0x20fa   :  { %v1456_v11 = vmul.f32 %v1455_v33, %v2401_v41 }
0x20fc   :  { %2017 = vtanh.f32 %v1456_v11 }
0x2106   :  { %v2018_v35 = vpop.eup %2017 }
0x2107   :  { %v1458_v17 = vmul.f32 %v2018_v35, %v2401_v41 }
0x2109   :  { %v1459_v36 = vadd.f32 %v1458_v17, %v2406_v13 }
0x210b   :  { %1462 = vrot.lane.b32.xlu1 %v1459_v36, %s2087_s9  ;;  %v1460_v40 = vmul.f32 %v1459_v36, %v1422_v5 }
0x217d   :  { %v1463_v37 = vpop.permute.xlu1 %1462 }
0x217e   :  { %v1465_v38 = vmul.f32 %v1463_v37, %v1459_v36 }
0x2180   :  { %1467 = vrot.lane.b32.xlu1 %v1465_v38, %s2088_s10 }
0x21f2   :  { %v1468_v42 = vpop.permute.xlu1 %1467 }
0x21f3   :  { %v1470_v43 = vadd.f32 %v1468_v42, %v1460_v40 }
0x21f5   :  { %2019 = vtanh.f32 %v1470_v43 }
0x21ff   :  { %v2020_v44 = vpop.eup %2019 }
0x2200   :  { %1473 = vrot.lane.b32.xlu0 %v2020_v44, %s2091_s18 }
0x2272   :  { %v1474_v45 = vpop.permute.xlu0 %1473 }
0x2273   :  { %v2497_v46 = vmul.f32 %v1474_v45, %v1459_v36 }
0x2275   :  { %1489 = vperm.xlu0 %1956, %v2497_v46   ;;  %1484 = vperm.xlu1 %1955, %v2497_v46  }
0x2279   :  { %1957 = vset.pattern.permute.xlu1 %v2092_v53 }
0x227a   :  { %1495 = vperm.xlu1 %1957, %v2497_v46  }
0x227e   :  { %1958 = vset.pattern.permute.xlu1 %v2093_v54 }
0x227f   :  { %1501 = vperm.xlu1 %1958, %v2497_v46  }
0x2283   :  { %1959 = vset.pattern.permute.xlu1 %v2090_v18 }
0x22f4   :  { %v1485_v47 = vpop.permute.xlu1 %1484  ;;  %v1490_v48 = vpop.permute.xlu0 %1489 }
0x22f5   :  { %v1492_v50 = vmul.f32 %v1490_v48, %v2383_v27  ;;  %v1487_v51 = vmul.f32 %v1485_v47, %v2381_v26 }
0x22f7   :  { %v1493_v55 = vadd.f32 %v1492_v50, %v1487_v51 }
0x22f9   :  { %v1496_v15 = vpop.permute.xlu1 %1495 }
0x22fa   :  { %v1498_v19 = vmul.f32 %v1496_v15, %v2387_v31 }
0x22fc   :  { %v1499_v57 = vadd.f32 %v1498_v19, %v1493_v55 }
0x22fe   :  { %v1502_v56 = vpop.permute.xlu1 %1501 }
0x22ff   :  { %v1504_v58 = vmul.f32 %v1502_v56, %v2390_v34 }
0x2301   :  { %v1505_v59 = vadd.f32 %v1504_v58, %v1499_v57 }
0x2303   :  { %v1506_v60 = vadd.f32 %v1505_v59, %v2398_v39 }
0x2305   :  { %v1507_v61 = vmul.f32 %v1506_v60, %v2401_v41 }
0x2307   :  { %2021 = vtanh.f32 %v1507_v61 }
0x2311   :  { %v2022_v62 = vpop.eup %2021 }
0x2312   :  { %v1509_v6 = vmul.f32 %v2022_v62, %v2401_v41 }
0x2314   :  { %v1510_v63 = vadd.f32 %v1509_v6, %v2406_v13 }
0x2316   :  { %1513 = vrot.lane.b32.xlu0 %v1510_v63, %s2087_s9  ;;  %v1511_v9 = vmul.f32 %v1510_v63, %v1470_v43 }
0x2388   :  { %v1514_v0 = vpop.permute.xlu0 %1513 }
0x2389   :  { %v1516_v1 = vmul.f32 %v1514_v0, %v1510_v63 }
0x238b   :  { %1518 = vrot.lane.b32.xlu1 %v1516_v1, %s2088_s10 }
0x23fd   :  { %v1519_v2 = vpop.permute.xlu1 %1518 }
0x23fe   :  { %v1521_v3 = vadd.f32 %v1519_v2, %v1511_v9 }
0x2400   :  { %2023 = vtanh.f32 %v1521_v3 }
0x240a   :  { %v2024_v4 = vpop.eup %2023 }
0x240b   :  { %1524 = vrot.lane.b32.xlu0 %v2024_v4, %s2091_s18 }
0x247d   :  { %v1525_v5 = vpop.permute.xlu0 %1524 }
0x247e   :  { %v2517_v7 = vmul.f32 %v1525_v5, %v1510_v63 }
0x2480   :  { %1540 = vperm.xlu0 %1956, %v2517_v7   ;;  %1535 = vperm.xlu1 %1959, %v2517_v7  }
0x2484   :  { %1961 = vset.pattern.permute.xlu0 %v2093_v54  ;;  %1960 = vset.pattern.permute.xlu1 %v2092_v53 }
0x2485   :  { %1552 = vperm.xlu0 %1961, %v2517_v7   ;;  %1546 = vperm.xlu1 %1960, %v2517_v7  }
0x2489   :  { %1963 = vset.pattern.permute.xlu0 %v2089_v52  ;;  %1962 = vset.pattern.permute.xlu1 %v2090_v18 }
0x24ff   :  { %v1541_v12 = vpop.permute.xlu0 %1540  ;;  %v1536_v16 = vpop.permute.xlu1 %1535 }
0x2500   :  { %v1543_v20 = vmul.f32 %v1541_v12, %v2383_v27  ;;  %v1538_v21 = vmul.f32 %v1536_v16, %v2381_v26 }
0x2502   :  { %v1544_v23 = vadd.f32 %v1543_v20, %v1538_v21 }
0x2504   :  { %v1553_v8 = vpop.permute.xlu0 %1552  ;;  %v1547_v10 = vpop.permute.xlu1 %1546 }
0x2505   :  { %v1549_v24 = vmul.f32 %v1547_v10, %v2387_v31  ;;  %v1555_v28 = vmul.f32 %v1553_v8, %v2390_v34 }
0x2507   :  { %v1550_v29 = vadd.f32 %v1549_v24, %v1544_v23 }
0x2509   :  { %v1556_v30 = vadd.f32 %v1555_v28, %v1550_v29 }
0x250b   :  { %v1557_v32 = vadd.f32 %v1556_v30, %v2398_v39 }
0x250d   :  { %v1558_v52 = vmul.f32 %v1557_v32, %v2401_v41 }
0x250f   :  { %2025 = vtanh.f32 %v1558_v52 }
0x2519   :  { %v2026_v18 = vpop.eup %2025 }
0x251a   :  { %v1560_v33 = vmul.f32 %v2026_v18, %v2401_v41 }
0x251c   :  { %v1561_v11 = vadd.f32 %v1560_v33, %v2406_v13 }
0x251e   :  { %1564 = vrot.lane.b32.xlu1 %v1561_v11, %s2087_s9  ;;  %v1562_v36 = vmul.f32 %v1561_v11, %v1521_v3 }
0x2590   :  { %v1565_v35 = vpop.permute.xlu1 %1564 }
0x2591   :  { %v1567_v17 = vmul.f32 %v1565_v35, %v1561_v11 }
0x2593   :  { %1569 = vrot.lane.b32.xlu1 %v1567_v17, %s2088_s10 }
0x2605   :  { %v1570_v37 = vpop.permute.xlu1 %1569 }
0x2606   :  { %v1572_v38 = vadd.f32 %v1570_v37, %v1562_v36 }
0x2608   :  { %2027 = vtanh.f32 %v1572_v38 }
0x2612   :  { %v2028_v40 = vpop.eup %2027 }
0x2613   :  { %1575 = vrot.lane.b32.xlu0 %v2028_v40, %s2091_s18 }
0x2685   :  { %v1576_v42 = vpop.permute.xlu0 %1575 }
0x2686   :  { %v1578_v43 = vmul.f32 %v1576_v42, %v1561_v11 }
0x2688   :  { %1591 = vperm.xlu0 %1963, %v1578_v43   ;;  %1586 = vperm.xlu1 %1962, %v1578_v43  }
0x268c   :  { %1964 = vset.pattern.permute.xlu1 %v2092_v53  ;;  %1966 = vset.pattern.permute.xlu0 %v2093_v54 }
0x268d   :  { %1597 = vperm.xlu1 %1964, %v1578_v43  }
0x2691   :  { %1965 = vset.pattern.permute.xlu1 %v2093_v54 }
0x2692   :  { %1603 = vperm.xlu1 %1965, %v1578_v43  }
0x2707   :  { %v1587_v44 = vpop.permute.xlu1 %1586  ;;  %v1592_v45 = vpop.permute.xlu0 %1591 }
0x2708   :  { %v1594_v47 = vmul.f32 %v1592_v45, %v2383_v27  ;;  %v1589_v48 = vmul.f32 %v1587_v44, %v2381_v26 }
0x270a   :  { %v1595_v15 = vadd.f32 %v1594_v47, %v1589_v48 }
0x270c   :  { %v1598_v50 = vpop.permute.xlu1 %1597 }
0x270d   :  { %v1600_v51 = vmul.f32 %v1598_v50, %v2387_v31 }
0x270f   :  { %v1601_v55 = vadd.f32 %v1600_v51, %v1595_v15 }
0x2711   :  { %v1604_v19 = vpop.permute.xlu1 %1603 }
0x2712   :  { %v1606_v53 = vmul.f32 %v1604_v19, %v2390_v34 }
0x2714   :  { %v1607_v56 = vadd.f32 %v1606_v53, %v1601_v55 }
0x2716   :  { %v1608_v57 = vadd.f32 %v1607_v56, %v2398_v39 }
0x2718   :  { %v1609_v54 = vmul.f32 %v1608_v57, %v2401_v41 }
0x271a   :  { %2029 = vtanh.f32 %v1609_v54 }
0x2724   :  { %v2030_v58 = vpop.eup %2029 }
0x2725   :  { %v1611_v59 = vmul.f32 %v2030_v58, %v2401_v41 }
0x2727   :  { %v1612_v27 = vadd.f32 %v1611_v59, %v2406_v13 }
0x2729   :  { %1615 = vrot.lane.b32.xlu0 %v1612_v27, %s2087_s9  ;;  %v1613_v34 = vmul.f32 %v1612_v27, %v1572_v38 }
0x279b   :  { %v1616_v26 = vpop.permute.xlu0 %1615 }
0x279c   :  { %v1618_v31 = vmul.f32 %v1616_v26, %v1612_v27 }
0x279e   :  { %1620 = vrot.lane.b32.xlu1 %v1618_v31, %s2088_s10 }
0x27a2   :  { %1277 = vrot.lane.b32.xlu1 %v2415_v25, %s2094_s19 }
0x27a6   :  { %1379 = vrot.lane.b32.xlu1 %v2456_v49, %s2095_s20 }
0x27aa   :  { %1529 = vrot.lane.b32.xlu1 %v2517_v7, %s2091_s18 }
0x2810   :  { %v1621_v39 = vpop.permute.xlu1 %1620 }
0x2811   :  { %v1623_v41 = vadd.f32 %v1621_v39, %v1613_v34 }
0x2813   :  { %2031 = vtanh.f32 %v1623_v41 }
0x2814   :  { %v1278_v13 = vpop.permute.xlu1 %1277 }
0x2815   :  { %1281 = vst.msk [vmem:[#allocation2] sm:$0x3] %vm1280_vm12, %v1278_v13 }
0x281d   :  { %v2032_v60 = vpop.eup %2031 }
0x281e   :  { %1626 = vrot.lane.b32.xlu0 %v2032_v60, %s2091_s18 }
0x2822   :  { %1328 = vrot.lane.b32.xlu0 %v2435_v22, %s2087_s9 }
0x2826   :  { %1478 = vrot.lane.b32.xlu0 %v2497_v46, %s2088_s10 }
0x282a   :  { %1580 = vrot.lane.b32.xlu0 %v1578_v43, %s2096_s21 }
0x282b   :  { %2044 = shalt.err (!%p2041_p4)
}
0x282c   :  { %s2045_s4 = scalar_lea.hbm %s2597_s12, 32 }
0x282d   :  { %p2046_p5 = scmp.ne.s32.totalorder %s2597_s12, %s2045_s4  ;;  %p2049_p6 = scmp.lt.u32.totalorder %s2045_s4, %s2597_s12 }
0x282f   :  { %p2051_p7 = pnand %p2049_p6, %p2046_p5 }
0x2831   :  { %2054 = shalt.err (!%p2051_p7)
}
0x2832   :  { %1655 = dma.vmem_to_hbm [thread:$0]  %s1653_s23, 32, %s2597_s12, [#allocation5]   ;;  %vm1331_vm13 = vcmask 58400   ;;  %v1380_v49 = vpop.permute.xlu1 %1379  ;;  %vm1382_vm14 = vcmask 91200   ;;  %vm1429_vm15 = vcmask 124000   ;;  %vm1481_vm0 = vcmask 156800  }
0x2833   :  { %s2098_s14 = smov 16   ;;  %vm1532_vm1 = vcmask 189600   ;;  %vm1583_vm2 = vcmask 222400   ;;  %s2099_s12 = smov [#allocation2]   ;;  %vm1634_vm3 = vcmask 255200  }
0x2834   :  { %s1642_s5 = sshll.u32 %s2099_s12, 4  ;;  %s1643_s5 = int_to_ptr.vmem [resolvable:$true] %s1642_s5 }
0x2835   :  { %s2055_s6 = scalar_lea.vmem %s1643_s5, 32  ;;  %p2060_p9 = scmp.lt.s32.totalorder %s1643_s5, %s1643_s5 }
0x2836   :  { %v1530_v62 = vpop.permute.xlu1 %1529  ;;  %p2056_p8 = scmp.ne.s32.totalorder %s1643_s5, %s2055_s6  ;;  %p2061_p10 = scmp.lt.s32.totalorder %s2055_s6, %s2055_s6 }
0x2838   :  { %p2062_p11 = por %p2061_p10, %p2060_p9 }
0x283a   :  { %p2063_p12 = pnand %p2062_p11, %p2056_p8 }
0x2890   :  { %v1627_v25 = vpop.permute.xlu0 %1626 }
0x2891   :  { %v1629_v22 = vmul.f32 %v1627_v25, %v1612_v27 }
0x2893   :  { %1631 = vrot.lane.b32.xlu1 %v1629_v22, %s2098_s14 }
0x2894   :  { %v1329_v46 = vpop.permute.xlu0 %1328 }
0x2895   :  { %1332 = vst.msk [vmem:[#allocation2] sm:$0x3] %vm1331_vm13, %v1329_v46 }
0x2896   :  { %1383 = vst.msk [vmem:[#allocation2] sm:$0x3] %vm1382_vm14, %v1380_v49 }
0x2897   :  { %1430 = vst.msk [vmem:[#allocation2] sm:$0x3] %vm1429_vm15, %v2476_v14 }
0x2898   :  { %v1479_v61 = vpop.permute.xlu0 %1478 }
0x2899   :  { %1482 = vst.msk [vmem:[#allocation2] sm:$0x3] %vm1481_vm0, %v1479_v61 }
0x289a   :  { %1533 = vst.msk [vmem:[#allocation2] sm:$0x3] %vm1532_vm1, %v1530_v62 }
0x289c   :  { %v1581_v6 = vpop.permute.xlu0 %1580 }
0x289d   :  { %1584 = vst.msk [vmem:[#allocation2] sm:$0x3] %vm1583_vm2, %v1581_v6 }
0x2905   :  { %v1632_v63 = vpop.permute.xlu1 %1631 }
0x2906   :  { %1635 = vst.msk [vmem:[#allocation2] sm:$0x3] %vm1634_vm3, %v1632_v63 }
0x2907   :  { %2066 = shalt.err (!%p2063_p12)
}
0x2908   :  { %s2067_s2 = scalar_lea.hbm %s2596_s11, 32 }
0x2909   :  { %p2068_p13 = scmp.ne.s32.totalorder %s2596_s11, %s2067_s2  ;;  %p2071_p0 = scmp.lt.u32.totalorder %s2067_s2, %s2596_s11 }
0x290b   :  { %p2073_p1 = pnand %p2071_p0, %p2068_p13 }
0x290d   :  { %2076 = shalt.err (!%p2073_p1)
}
0x290e   :  { %1645 = dma.vmem_to_hbm [thread:$0]  %s1643_s5, 32, %s2596_s11, [#allocation3]  }
0x290f   :  { %2077 = dma.done.wait [#allocation3], 32  }
0x2910   :  { %2078 = vsyncadd [#allocation3], 4294967264 }
0x2911   :  { %2079 = dma.done.wait [#allocation5], 32  }
0x2912   :  { %2080 = vsyncadd [#allocation5], 4294967264 }
0x2913   :  { %1662 = vsyncpa [#allocation3], 1 }
0x2914   :  { %1663 = vsyncpa [#allocation5], 1 }

</bundles_post_ra>
